<compile_context>
chip_gen: v5e
topology: v5e:2x2
jax: 0.10.0
libtpu: 0.0.40
codegen_flags: <defaults>
</compile_context>

<pallas_src>
import functools

import jax
import jax.numpy as jnp
import numpy as np
from jax import lax
from jax.experimental import pallas as pl
from jax.experimental.pallas import tpu as pltpu


# ------------------------------------------------------------------ kernel --

def _causal_chain_kernel(gx_ref, mask_ref, score_ref, whh_ref,
                         fc1w_ref, fc1b_ref, fcw_ref, fcb_ref, out_ref,
                         *, batch_pad, chain, hidden, pad_size, n_rows):
    """LSTM over time + masked time-sum + score-weighted chain max + MLP head.

    gx_ref    : (T*NP, 4H) pre-projected gate inputs (g-columns pre-scaled x2)
    mask_ref  : (T*NP, H)  mask pre-broadcast over lanes, time-major rows
    score_ref : (NP, H)    score pre-broadcast over lanes
    whh_ref   : (H, 4H)    recurrent weights (g-columns pre-scaled x2)
    """
    T = pad_size
    H = hidden
    NP = n_rows                      # padded rows = batch_pad * chain

    whh = whh_ref[...]               # (H, 4H)

    h = jnp.zeros((NP, H), jnp.float32)
    c = jnp.zeros((NP, H), jnp.float32)
    acc = jnp.zeros((NP, H), jnp.float32)

    # --- statically-unrolled recurrence (PyTorch gate order: i, f, g, o) ---
    for t in range(T):
        gates = (gx_ref[t * NP:(t + 1) * NP, :]
                 + jnp.dot(h, whh, preferred_element_type=jnp.float32))  # (NP, 4H)
        sig = jax.nn.sigmoid(gates)          # single full-width EUP pass
        i_g = sig[:, 0 * H:1 * H]
        f_g = sig[:, 1 * H:2 * H]
        # g columns were pre-scaled x2, so sigmoid(2x) here; tanh(x)=2*sigmoid(2x)-1
        g_g = 2.0 * sig[:, 2 * H:3 * H] - 1.0
        o_g = sig[:, 3 * H:4 * H]
        c = f_g * c + i_g * g_g
        h = o_g * jnp.tanh(c)
        acc = acc + h * mask_ref[t * NP:(t + 1) * NP, :]   # aligned VPU accumulate

    # --- score * summed hidden states, max over the chain axis -------------
    # rows are chain-major (n' = c*batch_pad + b) so the chain max is a static
    # elementwise max over sublane-aligned row blocks.
    scored = acc * score_ref[...]            # (NP, H)
    pooled = scored[0:batch_pad, :]
    for ci in range(1, chain):
        pooled = jnp.maximum(pooled, scored[ci * batch_pad:(ci + 1) * batch_pad, :])

    # --- MLP head; output is lane-dense (batch_pad, 128) -------------------
    h1 = jnp.maximum(jnp.dot(pooled, fc1w_ref[...],
                             preferred_element_type=jnp.float32) + fc1b_ref[...], 0.0)
    out_ref[...] = (jnp.dot(h1, fcw_ref[...],
                            preferred_element_type=jnp.float32) + fcb_ref[...])


# ----------------------------------------------------------------- wrapper --

def causal_chain_forward(ids, mask, score, params, *, batch, chain, pad_size,
                         embed, hidden, hidden2, num_classes):
    N = batch * chain
    T = pad_size
    H = hidden
    batch_pad = ((batch + 7) // 8) * 8            # pooled rows fill sublane tiles
    NP = batch_pad * chain
    nc_pad = ((num_classes + 127) // 128) * 128   # lane-dense output

    ids = ids.reshape(N, T).astype(jnp.int32)
    mask_f = mask.reshape(N, T).astype(jnp.float32)
    score_f = score.reshape(batch, chain).astype(jnp.float32)

    # --- tanh->sigmoid identity: scale g-gate (2H:3H) columns of wih, whh, b
    #     by 2 (must be applied consistently to all three + the proj table).
    wih_s = params["wih"].at[:, 2 * H:3 * H].multiply(2.0)
    whh_s = params["whh"].at[:, 2 * H:3 * H].multiply(2.0)
    b_s = params["b"].at[:, 2 * H:3 * H].multiply(2.0)

    # --- fold the input projection into the embedding gather ---------------
    proj_table = jnp.dot(params["embedding"], wih_s) + b_s          # (vocab, 4H)

    # Chain-major padded row order n' = c*batch_pad + b, fused into the gather
    # indices (no transpose of any activation tensor).
    ids_bc = ids.reshape(batch, chain, T).transpose(1, 0, 2)        # (chain, batch, T)
    ids_cm = jnp.zeros((chain, batch_pad, T), jnp.int32).at[:, :batch, :].set(ids_bc)
    ids_cm = ids_cm.reshape(NP, T)                                  # row n' = c*batch_pad+b
    ids_tm = ids_cm.T.reshape(T * NP)                               # flat index t*NP + n'
    gx = jnp.take(proj_table, ids_tm, axis=0)                       # (T*NP, 4H)

    # Mask pre-broadcast over H lanes, time-major rows matching gx.
    mask_bc = mask_f.reshape(batch, chain, T).transpose(1, 0, 2)    # (chain, batch, T)
    mask_cm = jnp.zeros((chain, batch_pad, T), jnp.float32).at[:, :batch, :].set(mask_bc)
    mask_cm = mask_cm.reshape(NP, T)
    mask_full = jnp.broadcast_to(mask_cm.T.reshape(T * NP, 1), (T * NP, H))

    # Score pre-broadcast over H lanes; zero on padded rows (neutralizes them).
    score_cm = jnp.zeros((chain, batch_pad), jnp.float32).at[:, :batch].set(score_f.T)
    score_full = jnp.broadcast_to(score_cm.reshape(NP, 1), (NP, H))

    # FC head: lane-dense padded output weights/bias; biases pre-broadcast to
    # consumer row counts so the kernel does no sublane broadcasts.
    fcw_pad = jnp.zeros((hidden2, nc_pad), jnp.float32).at[:, :num_classes].set(params["fcw"])
    fcb_pad = jnp.zeros((batch_pad, nc_pad), jnp.float32).at[:, :num_classes].set(
        jnp.broadcast_to(params["fcb"], (batch_pad, num_classes)))
    fc1b_full = jnp.broadcast_to(params["fc1b"], (batch_pad, hidden2))

    kernel = functools.partial(_causal_chain_kernel, batch_pad=batch_pad,
                               chain=chain, hidden=hidden, pad_size=T, n_rows=NP)

    out = pl.pallas_call(
        kernel,
        out_shape=jax.ShapeDtypeStruct((batch_pad, nc_pad), jnp.float32),
        in_specs=[pl.BlockSpec(memory_space=pltpu.MemorySpace.VMEM)] * 8,
        out_specs=pl.BlockSpec(memory_space=pltpu.MemorySpace.VMEM),
    )(gx, mask_full, score_full, whh_s,
      params["fc1w"], fc1b_full, fcw_pad, fcb_pad)

    return out[:batch, :num_classes]


# --------------------------------------------------------- plain-JAX check --

def reference_forward(ids, mask, score, params, *, batch, chain, pad_size,
                      embed, hidden, hidden2, num_classes):
    N = batch * chain
    ids = ids.reshape(N, pad_size)
    emb = jnp.take(params["embedding"], ids, axis=0)                  # (N, T, E)
    H = hidden

    def step(carry, x_t):
        h, c = carry
        gates = jnp.dot(x_t, params["wih"]) + jnp.dot(h, params["whh"]) + params["b"]
        i_g = jax.nn.sigmoid(gates[:, 0 * H:1 * H])
        f_g = jax.nn.sigmoid(gates[:, 1 * H:2 * H])
        g_g = jnp.tanh(gates[:, 2 * H:3 * H])
        o_g = jax.nn.sigmoid(gates[:, 3 * H:4 * H])
        c_new = f_g * c + i_g * g_g
        h_new = o_g * jnp.tanh(c_new)
        return (h_new, c_new), h_new

    h0 = jnp.zeros((N, H), jnp.float32)
    (_, _), hs = lax.scan(step, (h0, h0), emb.transpose(1, 0, 2))     # (T, N, H)
    hs = hs.transpose(1, 0, 2)                                        # (N, T, H)
    hs = hs * mask.reshape(N, pad_size, 1).astype(jnp.float32)
    summed = hs.sum(axis=1)                                           # (N, H)
    out = summed.reshape(batch, chain, H)
    out = score.reshape(batch, chain, 1).astype(jnp.float32) * out
    out = out.max(axis=1)
    out = jnp.maximum(jnp.dot(out, params["fc1w"]) + params["fc1b"], 0.0)
    out = jnp.dot(out, params["fcw"]) + params["fcb"]
    return out


# -------------------------------------------------------------------- main --

if __name__ == "__main__":
    # config (small shapes consistent with the module)
    batch, chain, pad_size = 2, 2, 8
    vocab, embed = 50, 32
    hidden, hidden2, num_classes = 32, 32, 4

    key = jax.random.PRNGKey(0)
    ks = jax.random.split(key, 12)

    params = {
        "embedding": 0.1 * jax.random.normal(ks[0], (vocab, embed), jnp.float32),
        # LSTM weights (stored transposed: (in, 4H)); bias = bias_ih + bias_hh folded.
        "wih": 0.1 * jax.random.normal(ks[1], (embed, 4 * hidden), jnp.float32),
        "whh": 0.1 * jax.random.normal(ks[2], (hidden, 4 * hidden), jnp.float32),
        "b": 0.1 * jax.random.normal(ks[3], (1, 4 * hidden), jnp.float32),
        # fc1: hidden -> hidden2 ; fc: hidden2 -> num_classes
        "fc1w": 0.1 * jax.random.normal(ks[4], (hidden, hidden2), jnp.float32),
        "fc1b": 0.1 * jax.random.normal(ks[5], (1, hidden2), jnp.float32),
        "fcw": 0.1 * jax.random.normal(ks[6], (hidden2, num_classes), jnp.float32),
        "fcb": 0.1 * jax.random.normal(ks[7], (1, num_classes), jnp.float32),
    }

    N = batch * chain
    ids = jax.random.randint(ks[8], (N, pad_size), 0, vocab, dtype=jnp.int32)      # x[0]
    mask = (jax.random.uniform(ks[9], (N, pad_size)) > 0.3).astype(jnp.float32)    # x[1]
    score = jax.random.uniform(ks[10], (batch, chain), jnp.float32)                # x[2]

    kwargs = dict(batch=batch, chain=chain, pad_size=pad_size, embed=embed,
                  hidden=hidden, hidden2=hidden2, num_classes=num_classes)

    out = causal_chain_forward(ids, mask, score, params, **kwargs)
    out = jax.block_until_ready(out)

    ref = jax.block_until_ready(reference_forward(ids, mask, score, params, **kwargs))

    assert out.shape == (batch, num_classes), out.shape
    assert bool(jnp.all(jnp.isfinite(out)))
    np.testing.assert_allclose(np.asarray(out), np.asarray(ref), rtol=1e-2, atol=1e-2)

    print("KERNEL_OK")
</pallas_src>

<mosaic_0001>
module attributes {stable_mosaic.version = 11 : i64} {
  func.func @_causal_chain_kernel(%arg0: memref<128x128xf32, #tpu.memory_space<vmem>>, %arg1: memref<128x32xf32, #tpu.memory_space<vmem>>, %arg2: memref<16x32xf32, #tpu.memory_space<vmem>>, %arg3: memref<32x128xf32, #tpu.memory_space<vmem>>, %arg4: memref<32x32xf32, #tpu.memory_space<vmem>>, %arg5: memref<8x32xf32, #tpu.memory_space<vmem>>, %arg6: memref<32x128xf32, #tpu.memory_space<vmem>>, %arg7: memref<8x128xf32, #tpu.memory_space<vmem>>, %arg8: memref<8x128xf32, #tpu.memory_space<vmem>>) attributes {dimension_semantics = [], scalar_prefetch = 0 : i64, scratch_operands = 0 : i64, tpu.core_type = #tpu.core_type<tc>} {
    %c0 = arith.constant 0 : index
    %c0_0 = arith.constant 0 : index
    %0 = vector.load %arg3[%c0, %c0_0] : memref<32x128xf32, #tpu.memory_space<vmem>>, vector<32x128xf32>
    %cst = arith.constant 0.000000e+00 : f32
    %1 = vector.broadcast %cst : f32 to vector<16x32xf32>
    %cst_1 = arith.constant 0.000000e+00 : f32
    %2 = vector.broadcast %cst_1 : f32 to vector<16x32xf32>
    %cst_2 = arith.constant 0.000000e+00 : f32
    %3 = vector.broadcast %cst_2 : f32 to vector<16x32xf32>
    %c0_3 = arith.constant 0 : index
    %c0_4 = arith.constant 0 : index
    %4 = vector.load %arg0[%c0_3, %c0_4] : memref<128x128xf32, #tpu.memory_space<vmem>>, vector<16x128xf32>
    %cst_5 = arith.constant dense<0.000000e+00> : vector<16x128xf32>
    %5 = tpu.matmul %1, %0, %cst_5 {dimension_numbers = #tpu.dot_dimension_numbers<[1], [0], [0], [1], [0, 0, 1, 1], [], []>} : vector<16x32xf32>, vector<32x128xf32>, vector<16x128xf32> -> vector<16x128xf32>
    %6 = arith.addf %4, %5 : vector<16x128xf32>
    %7 = arith.negf %6 : vector<16x128xf32>
    %8 = math.exp %7 : vector<16x128xf32>
    %cst_6 = arith.constant 1.000000e+00 : f32
    %9 = vector.broadcast %cst_6 : f32 to vector<16x128xf32>
    %10 = arith.addf %9, %8 : vector<16x128xf32>
    %11 = arith.divf %9, %10 : vector<16x128xf32>
    %12 = vector.extract_strided_slice %11 {offsets = [0, 0], sizes = [16, 32], strides = [1, 1]} : vector<16x128xf32> to vector<16x32xf32>
    %13 = vector.extract_strided_slice %11 {offsets = [0, 32], sizes = [16, 32], strides = [1, 1]} : vector<16x128xf32> to vector<16x32xf32>
    %14 = vector.extract_strided_slice %11 {offsets = [0, 64], sizes = [16, 32], strides = [1, 1]} : vector<16x128xf32> to vector<16x32xf32>
    %cst_7 = arith.constant 2.000000e+00 : f32
    %15 = vector.broadcast %cst_7 : f32 to vector<16x32xf32>
    %16 = arith.mulf %15, %14 : vector<16x32xf32>
    %cst_8 = arith.constant 1.000000e+00 : f32
    %17 = vector.broadcast %cst_8 : f32 to vector<16x32xf32>
    %18 = arith.subf %16, %17 : vector<16x32xf32>
    %19 = vector.extract_strided_slice %11 {offsets = [0, 96], sizes = [16, 32], strides = [1, 1]} : vector<16x128xf32> to vector<16x32xf32>
    %20 = arith.mulf %13, %2 : vector<16x32xf32>
    %21 = arith.mulf %12, %18 : vector<16x32xf32>
    %22 = arith.addf %20, %21 : vector<16x32xf32>
    %23 = math.tanh %22 : vector<16x32xf32>
    %24 = arith.mulf %19, %23 : vector<16x32xf32>
    %c0_9 = arith.constant 0 : index
    %c0_10 = arith.constant 0 : index
    %25 = vector.load %arg1[%c0_9, %c0_10] : memref<128x32xf32, #tpu.memory_space<vmem>>, vector<16x32xf32>
    %26 = arith.mulf %24, %25 : vector<16x32xf32>
    %27 = arith.addf %3, %26 : vector<16x32xf32>
    %c16 = arith.constant 16 : index
    %c0_11 = arith.constant 0 : index
    %28 = vector.load %arg0[%c16, %c0_11] : memref<128x128xf32, #tpu.memory_space<vmem>>, vector<16x128xf32>
    %cst_12 = arith.constant dense<0.000000e+00> : vector<16x128xf32>
    %29 = tpu.matmul %24, %0, %cst_12 {dimension_numbers = #tpu.dot_dimension_numbers<[1], [0], [0], [1], [0, 0, 1, 1], [], []>} : vector<16x32xf32>, vector<32x128xf32>, vector<16x128xf32> -> vector<16x128xf32>
    %30 = arith.addf %28, %29 : vector<16x128xf32>
    %31 = arith.negf %30 : vector<16x128xf32>
    %32 = math.exp %31 : vector<16x128xf32>
    %cst_13 = arith.constant 1.000000e+00 : f32
    %33 = vector.broadcast %cst_13 : f32 to vector<16x128xf32>
    %34 = arith.addf %33, %32 : vector<16x128xf32>
    %35 = arith.divf %33, %34 : vector<16x128xf32>
    %36 = vector.extract_strided_slice %35 {offsets = [0, 0], sizes = [16, 32], strides = [1, 1]} : vector<16x128xf32> to vector<16x32xf32>
    %37 = vector.extract_strided_slice %35 {offsets = [0, 32], sizes = [16, 32], strides = [1, 1]} : vector<16x128xf32> to vector<16x32xf32>
    %38 = vector.extract_strided_slice %35 {offsets = [0, 64], sizes = [16, 32], strides = [1, 1]} : vector<16x128xf32> to vector<16x32xf32>
    %cst_14 = arith.constant 2.000000e+00 : f32
    %39 = vector.broadcast %cst_14 : f32 to vector<16x32xf32>
    %40 = arith.mulf %39, %38 : vector<16x32xf32>
    %cst_15 = arith.constant 1.000000e+00 : f32
    %41 = vector.broadcast %cst_15 : f32 to vector<16x32xf32>
    %42 = arith.subf %40, %41 : vector<16x32xf32>
    %43 = vector.extract_strided_slice %35 {offsets = [0, 96], sizes = [16, 32], strides = [1, 1]} : vector<16x128xf32> to vector<16x32xf32>
    %44 = arith.mulf %37, %22 : vector<16x32xf32>
    %45 = arith.mulf %36, %42 : vector<16x32xf32>
    %46 = arith.addf %44, %45 : vector<16x32xf32>
    %47 = math.tanh %46 : vector<16x32xf32>
    %48 = arith.mulf %43, %47 : vector<16x32xf32>
    %c16_16 = arith.constant 16 : index
    %c0_17 = arith.constant 0 : index
    %49 = vector.load %arg1[%c16_16, %c0_17] : memref<128x32xf32, #tpu.memory_space<vmem>>, vector<16x32xf32>
    %50 = arith.mulf %48, %49 : vector<16x32xf32>
    %51 = arith.addf %27, %50 : vector<16x32xf32>
    %c32 = arith.constant 32 : index
    %c0_18 = arith.constant 0 : index
    %52 = vector.load %arg0[%c32, %c0_18] : memref<128x128xf32, #tpu.memory_space<vmem>>, vector<16x128xf32>
    %cst_19 = arith.constant dense<0.000000e+00> : vector<16x128xf32>
    %53 = tpu.matmul %48, %0, %cst_19 {dimension_numbers = #tpu.dot_dimension_numbers<[1], [0], [0], [1], [0, 0, 1, 1], [], []>} : vector<16x32xf32>, vector<32x128xf32>, vector<16x128xf32> -> vector<16x128xf32>
    %54 = arith.addf %52, %53 : vector<16x128xf32>
    %55 = arith.negf %54 : vector<16x128xf32>
    %56 = math.exp %55 : vector<16x128xf32>
    %cst_20 = arith.constant 1.000000e+00 : f32
    %57 = vector.broadcast %cst_20 : f32 to vector<16x128xf32>
    %58 = arith.addf %57, %56 : vector<16x128xf32>
    %59 = arith.divf %57, %58 : vector<16x128xf32>
    %60 = vector.extract_strided_slice %59 {offsets = [0, 0], sizes = [16, 32], strides = [1, 1]} : vector<16x128xf32> to vector<16x32xf32>
    %61 = vector.extract_strided_slice %59 {offsets = [0, 32], sizes = [16, 32], strides = [1, 1]} : vector<16x128xf32> to vector<16x32xf32>
    %62 = vector.extract_strided_slice %59 {offsets = [0, 64], sizes = [16, 32], strides = [1, 1]} : vector<16x128xf32> to vector<16x32xf32>
    %cst_21 = arith.constant 2.000000e+00 : f32
    %63 = vector.broadcast %cst_21 : f32 to vector<16x32xf32>
    %64 = arith.mulf %63, %62 : vector<16x32xf32>
    %cst_22 = arith.constant 1.000000e+00 : f32
    %65 = vector.broadcast %cst_22 : f32 to vector<16x32xf32>
    %66 = arith.subf %64, %65 : vector<16x32xf32>
    %67 = vector.extract_strided_slice %59 {offsets = [0, 96], sizes = [16, 32], strides = [1, 1]} : vector<16x128xf32> to vector<16x32xf32>
    %68 = arith.mulf %61, %46 : vector<16x32xf32>
    %69 = arith.mulf %60, %66 : vector<16x32xf32>
    %70 = arith.addf %68, %69 : vector<16x32xf32>
    %71 = math.tanh %70 : vector<16x32xf32>
    %72 = arith.mulf %67, %71 : vector<16x32xf32>
    %c32_23 = arith.constant 32 : index
    %c0_24 = arith.constant 0 : index
    %73 = vector.load %arg1[%c32_23, %c0_24] : memref<128x32xf32, #tpu.memory_space<vmem>>, vector<16x32xf32>
    %74 = arith.mulf %72, %73 : vector<16x32xf32>
    %75 = arith.addf %51, %74 : vector<16x32xf32>
    %c48 = arith.constant 48 : index
    %c0_25 = arith.constant 0 : index
    %76 = vector.load %arg0[%c48, %c0_25] : memref<128x128xf32, #tpu.memory_space<vmem>>, vector<16x128xf32>
    %cst_26 = arith.constant dense<0.000000e+00> : vector<16x128xf32>
    %77 = tpu.matmul %72, %0, %cst_26 {dimension_numbers = #tpu.dot_dimension_numbers<[1], [0], [0], [1], [0, 0, 1, 1], [], []>} : vector<16x32xf32>, vector<32x128xf32>, vector<16x128xf32> -> vector<16x128xf32>
    %78 = arith.addf %76, %77 : vector<16x128xf32>
    %79 = arith.negf %78 : vector<16x128xf32>
    %80 = math.exp %79 : vector<16x128xf32>
    %cst_27 = arith.constant 1.000000e+00 : f32
    %81 = vector.broadcast %cst_27 : f32 to vector<16x128xf32>
    %82 = arith.addf %81, %80 : vector<16x128xf32>
    %83 = arith.divf %81, %82 : vector<16x128xf32>
    %84 = vector.extract_strided_slice %83 {offsets = [0, 0], sizes = [16, 32], strides = [1, 1]} : vector<16x128xf32> to vector<16x32xf32>
    %85 = vector.extract_strided_slice %83 {offsets = [0, 32], sizes = [16, 32], strides = [1, 1]} : vector<16x128xf32> to vector<16x32xf32>
    %86 = vector.extract_strided_slice %83 {offsets = [0, 64], sizes = [16, 32], strides = [1, 1]} : vector<16x128xf32> to vector<16x32xf32>
    %cst_28 = arith.constant 2.000000e+00 : f32
    %87 = vector.broadcast %cst_28 : f32 to vector<16x32xf32>
    %88 = arith.mulf %87, %86 : vector<16x32xf32>
    %cst_29 = arith.constant 1.000000e+00 : f32
    %89 = vector.broadcast %cst_29 : f32 to vector<16x32xf32>
    %90 = arith.subf %88, %89 : vector<16x32xf32>
    %91 = vector.extract_strided_slice %83 {offsets = [0, 96], sizes = [16, 32], strides = [1, 1]} : vector<16x128xf32> to vector<16x32xf32>
    %92 = arith.mulf %85, %70 : vector<16x32xf32>
    %93 = arith.mulf %84, %90 : vector<16x32xf32>
    %94 = arith.addf %92, %93 : vector<16x32xf32>
    %95 = math.tanh %94 : vector<16x32xf32>
    %96 = arith.mulf %91, %95 : vector<16x32xf32>
    %c48_30 = arith.constant 48 : index
    %c0_31 = arith.constant 0 : index
    %97 = vector.load %arg1[%c48_30, %c0_31] : memref<128x32xf32, #tpu.memory_space<vmem>>, vector<16x32xf32>
    %98 = arith.mulf %96, %97 : vector<16x32xf32>
    %99 = arith.addf %75, %98 : vector<16x32xf32>
    %c64 = arith.constant 64 : index
    %c0_32 = arith.constant 0 : index
    %100 = vector.load %arg0[%c64, %c0_32] : memref<128x128xf32, #tpu.memory_space<vmem>>, vector<16x128xf32>
    %cst_33 = arith.constant dense<0.000000e+00> : vector<16x128xf32>
    %101 = tpu.matmul %96, %0, %cst_33 {dimension_numbers = #tpu.dot_dimension_numbers<[1], [0], [0], [1], [0, 0, 1, 1], [], []>} : vector<16x32xf32>, vector<32x128xf32>, vector<16x128xf32> -> vector<16x128xf32>
    %102 = arith.addf %100, %101 : vector<16x128xf32>
    %103 = arith.negf %102 : vector<16x128xf32>
    %104 = math.exp %103 : vector<16x128xf32>
    %cst_34 = arith.constant 1.000000e+00 : f32
    %105 = vector.broadcast %cst_34 : f32 to vector<16x128xf32>
    %106 = arith.addf %105, %104 : vector<16x128xf32>
    %107 = arith.divf %105, %106 : vector<16x128xf32>
    %108 = vector.extract_strided_slice %107 {offsets = [0, 0], sizes = [16, 32], strides = [1, 1]} : vector<16x128xf32> to vector<16x32xf32>
    %109 = vector.extract_strided_slice %107 {offsets = [0, 32], sizes = [16, 32], strides = [1, 1]} : vector<16x128xf32> to vector<16x32xf32>
    %110 = vector.extract_strided_slice %107 {offsets = [0, 64], sizes = [16, 32], strides = [1, 1]} : vector<16x128xf32> to vector<16x32xf32>
    %cst_35 = arith.constant 2.000000e+00 : f32
    %111 = vector.broadcast %cst_35 : f32 to vector<16x32xf32>
    %112 = arith.mulf %111, %110 : vector<16x32xf32>
    %cst_36 = arith.constant 1.000000e+00 : f32
    %113 = vector.broadcast %cst_36 : f32 to vector<16x32xf32>
    %114 = arith.subf %112, %113 : vector<16x32xf32>
    %115 = vector.extract_strided_slice %107 {offsets = [0, 96], sizes = [16, 32], strides = [1, 1]} : vector<16x128xf32> to vector<16x32xf32>
    %116 = arith.mulf %109, %94 : vector<16x32xf32>
    %117 = arith.mulf %108, %114 : vector<16x32xf32>
    %118 = arith.addf %116, %117 : vector<16x32xf32>
    %119 = math.tanh %118 : vector<16x32xf32>
    %120 = arith.mulf %115, %119 : vector<16x32xf32>
    %c64_37 = arith.constant 64 : index
    %c0_38 = arith.constant 0 : index
    %121 = vector.load %arg1[%c64_37, %c0_38] : memref<128x32xf32, #tpu.memory_space<vmem>>, vector<16x32xf32>
    %122 = arith.mulf %120, %121 : vector<16x32xf32>
    %123 = arith.addf %99, %122 : vector<16x32xf32>
    %c80 = arith.constant 80 : index
    %c0_39 = arith.constant 0 : index
    %124 = vector.load %arg0[%c80, %c0_39] : memref<128x128xf32, #tpu.memory_space<vmem>>, vector<16x128xf32>
    %cst_40 = arith.constant dense<0.000000e+00> : vector<16x128xf32>
    %125 = tpu.matmul %120, %0, %cst_40 {dimension_numbers = #tpu.dot_dimension_numbers<[1], [0], [0], [1], [0, 0, 1, 1], [], []>} : vector<16x32xf32>, vector<32x128xf32>, vector<16x128xf32> -> vector<16x128xf32>
    %126 = arith.addf %124, %125 : vector<16x128xf32>
    %127 = arith.negf %126 : vector<16x128xf32>
    %128 = math.exp %127 : vector<16x128xf32>
    %cst_41 = arith.constant 1.000000e+00 : f32
    %129 = vector.broadcast %cst_41 : f32 to vector<16x128xf32>
    %130 = arith.addf %129, %128 : vector<16x128xf32>
    %131 = arith.divf %129, %130 : vector<16x128xf32>
    %132 = vector.extract_strided_slice %131 {offsets = [0, 0], sizes = [16, 32], strides = [1, 1]} : vector<16x128xf32> to vector<16x32xf32>
    %133 = vector.extract_strided_slice %131 {offsets = [0, 32], sizes = [16, 32], strides = [1, 1]} : vector<16x128xf32> to vector<16x32xf32>
    %134 = vector.extract_strided_slice %131 {offsets = [0, 64], sizes = [16, 32], strides = [1, 1]} : vector<16x128xf32> to vector<16x32xf32>
    %cst_42 = arith.constant 2.000000e+00 : f32
    %135 = vector.broadcast %cst_42 : f32 to vector<16x32xf32>
    %136 = arith.mulf %135, %134 : vector<16x32xf32>
    %cst_43 = arith.constant 1.000000e+00 : f32
    %137 = vector.broadcast %cst_43 : f32 to vector<16x32xf32>
    %138 = arith.subf %136, %137 : vector<16x32xf32>
    %139 = vector.extract_strided_slice %131 {offsets = [0, 96], sizes = [16, 32], strides = [1, 1]} : vector<16x128xf32> to vector<16x32xf32>
    %140 = arith.mulf %133, %118 : vector<16x32xf32>
    %141 = arith.mulf %132, %138 : vector<16x32xf32>
    %142 = arith.addf %140, %141 : vector<16x32xf32>
    %143 = math.tanh %142 : vector<16x32xf32>
    %144 = arith.mulf %139, %143 : vector<16x32xf32>
    %c80_44 = arith.constant 80 : index
    %c0_45 = arith.constant 0 : index
    %145 = vector.load %arg1[%c80_44, %c0_45] : memref<128x32xf32, #tpu.memory_space<vmem>>, vector<16x32xf32>
    %146 = arith.mulf %144, %145 : vector<16x32xf32>
    %147 = arith.addf %123, %146 : vector<16x32xf32>
    %c96 = arith.constant 96 : index
    %c0_46 = arith.constant 0 : index
    %148 = vector.load %arg0[%c96, %c0_46] : memref<128x128xf32, #tpu.memory_space<vmem>>, vector<16x128xf32>
    %cst_47 = arith.constant dense<0.000000e+00> : vector<16x128xf32>
    %149 = tpu.matmul %144, %0, %cst_47 {dimension_numbers = #tpu.dot_dimension_numbers<[1], [0], [0], [1], [0, 0, 1, 1], [], []>} : vector<16x32xf32>, vector<32x128xf32>, vector<16x128xf32> -> vector<16x128xf32>
    %150 = arith.addf %148, %149 : vector<16x128xf32>
    %151 = arith.negf %150 : vector<16x128xf32>
    %152 = math.exp %151 : vector<16x128xf32>
    %cst_48 = arith.constant 1.000000e+00 : f32
    %153 = vector.broadcast %cst_48 : f32 to vector<16x128xf32>
    %154 = arith.addf %153, %152 : vector<16x128xf32>
    %155 = arith.divf %153, %154 : vector<16x128xf32>
    %156 = vector.extract_strided_slice %155 {offsets = [0, 0], sizes = [16, 32], strides = [1, 1]} : vector<16x128xf32> to vector<16x32xf32>
    %157 = vector.extract_strided_slice %155 {offsets = [0, 32], sizes = [16, 32], strides = [1, 1]} : vector<16x128xf32> to vector<16x32xf32>
    %158 = vector.extract_strided_slice %155 {offsets = [0, 64], sizes = [16, 32], strides = [1, 1]} : vector<16x128xf32> to vector<16x32xf32>
    %cst_49 = arith.constant 2.000000e+00 : f32
    %159 = vector.broadcast %cst_49 : f32 to vector<16x32xf32>
    %160 = arith.mulf %159, %158 : vector<16x32xf32>
    %cst_50 = arith.constant 1.000000e+00 : f32
    %161 = vector.broadcast %cst_50 : f32 to vector<16x32xf32>
    %162 = arith.subf %160, %161 : vector<16x32xf32>
    %163 = vector.extract_strided_slice %155 {offsets = [0, 96], sizes = [16, 32], strides = [1, 1]} : vector<16x128xf32> to vector<16x32xf32>
    %164 = arith.mulf %157, %142 : vector<16x32xf32>
    %165 = arith.mulf %156, %162 : vector<16x32xf32>
    %166 = arith.addf %164, %165 : vector<16x32xf32>
    %167 = math.tanh %166 : vector<16x32xf32>
    %168 = arith.mulf %163, %167 : vector<16x32xf32>
    %c96_51 = arith.constant 96 : index
    %c0_52 = arith.constant 0 : index
    %169 = vector.load %arg1[%c96_51, %c0_52] : memref<128x32xf32, #tpu.memory_space<vmem>>, vector<16x32xf32>
    %170 = arith.mulf %168, %169 : vector<16x32xf32>
    %171 = arith.addf %147, %170 : vector<16x32xf32>
    %c112 = arith.constant 112 : index
    %c0_53 = arith.constant 0 : index
    %172 = vector.load %arg0[%c112, %c0_53] : memref<128x128xf32, #tpu.memory_space<vmem>>, vector<16x128xf32>
    %cst_54 = arith.constant dense<0.000000e+00> : vector<16x128xf32>
    %173 = tpu.matmul %168, %0, %cst_54 {dimension_numbers = #tpu.dot_dimension_numbers<[1], [0], [0], [1], [0, 0, 1, 1], [], []>} : vector<16x32xf32>, vector<32x128xf32>, vector<16x128xf32> -> vector<16x128xf32>
    %174 = arith.addf %172, %173 : vector<16x128xf32>
    %175 = arith.negf %174 : vector<16x128xf32>
    %176 = math.exp %175 : vector<16x128xf32>
    %cst_55 = arith.constant 1.000000e+00 : f32
    %177 = vector.broadcast %cst_55 : f32 to vector<16x128xf32>
    %178 = arith.addf %177, %176 : vector<16x128xf32>
    %179 = arith.divf %177, %178 : vector<16x128xf32>
    %180 = vector.extract_strided_slice %179 {offsets = [0, 0], sizes = [16, 32], strides = [1, 1]} : vector<16x128xf32> to vector<16x32xf32>
    %181 = vector.extract_strided_slice %179 {offsets = [0, 32], sizes = [16, 32], strides = [1, 1]} : vector<16x128xf32> to vector<16x32xf32>
    %182 = vector.extract_strided_slice %179 {offsets = [0, 64], sizes = [16, 32], strides = [1, 1]} : vector<16x128xf32> to vector<16x32xf32>
    %cst_56 = arith.constant 2.000000e+00 : f32
    %183 = vector.broadcast %cst_56 : f32 to vector<16x32xf32>
    %184 = arith.mulf %183, %182 : vector<16x32xf32>
    %cst_57 = arith.constant 1.000000e+00 : f32
    %185 = vector.broadcast %cst_57 : f32 to vector<16x32xf32>
    %186 = arith.subf %184, %185 : vector<16x32xf32>
    %187 = vector.extract_strided_slice %179 {offsets = [0, 96], sizes = [16, 32], strides = [1, 1]} : vector<16x128xf32> to vector<16x32xf32>
    %188 = arith.mulf %181, %166 : vector<16x32xf32>
    %189 = arith.mulf %180, %186 : vector<16x32xf32>
    %190 = arith.addf %188, %189 : vector<16x32xf32>
    %191 = math.tanh %190 : vector<16x32xf32>
    %192 = arith.mulf %187, %191 : vector<16x32xf32>
    %c112_58 = arith.constant 112 : index
    %c0_59 = arith.constant 0 : index
    %193 = vector.load %arg1[%c112_58, %c0_59] : memref<128x32xf32, #tpu.memory_space<vmem>>, vector<16x32xf32>
    %194 = arith.mulf %192, %193 : vector<16x32xf32>
    %195 = arith.addf %171, %194 : vector<16x32xf32>
    %c0_60 = arith.constant 0 : index
    %c0_61 = arith.constant 0 : index
    %196 = vector.load %arg2[%c0_60, %c0_61] : memref<16x32xf32, #tpu.memory_space<vmem>>, vector<16x32xf32>
    %197 = arith.mulf %195, %196 : vector<16x32xf32>
    %198 = vector.extract_strided_slice %197 {offsets = [0, 0], sizes = [8, 32], strides = [1, 1]} : vector<16x32xf32> to vector<8x32xf32>
    %199 = vector.extract_strided_slice %197 {offsets = [8, 0], sizes = [8, 32], strides = [1, 1]} : vector<16x32xf32> to vector<8x32xf32>
    %200 = arith.maximumf %198, %199 : vector<8x32xf32>
    %c0_62 = arith.constant 0 : index
    %c0_63 = arith.constant 0 : index
    %201 = vector.load %arg4[%c0_62, %c0_63] : memref<32x32xf32, #tpu.memory_space<vmem>>, vector<32x32xf32>
    %cst_64 = arith.constant dense<0.000000e+00> : vector<8x32xf32>
    %202 = tpu.matmul %200, %201, %cst_64 {dimension_numbers = #tpu.dot_dimension_numbers<[1], [0], [0], [1], [0, 0, 1, 1], [], []>} : vector<8x32xf32>, vector<32x32xf32>, vector<8x32xf32> -> vector<8x32xf32>
    %c0_65 = arith.constant 0 : index
    %c0_66 = arith.constant 0 : index
    %203 = vector.load %arg5[%c0_65, %c0_66] : memref<8x32xf32, #tpu.memory_space<vmem>>, vector<8x32xf32>
    %204 = arith.addf %202, %203 : vector<8x32xf32>
    %cst_67 = arith.constant 0.000000e+00 : f32
    %205 = vector.broadcast %cst_67 : f32 to vector<8x32xf32>
    %206 = arith.maximumf %204, %205 : vector<8x32xf32>
    %c0_68 = arith.constant 0 : index
    %c0_69 = arith.constant 0 : index
    %207 = vector.load %arg6[%c0_68, %c0_69] : memref<32x128xf32, #tpu.memory_space<vmem>>, vector<32x128xf32>
    %cst_70 = arith.constant dense<0.000000e+00> : vector<8x128xf32>
    %208 = tpu.matmul %206, %207, %cst_70 {dimension_numbers = #tpu.dot_dimension_numbers<[1], [0], [0], [1], [0, 0, 1, 1], [], []>} : vector<8x32xf32>, vector<32x128xf32>, vector<8x128xf32> -> vector<8x128xf32>
    %c0_71 = arith.constant 0 : index
    %c0_72 = arith.constant 0 : index
    %209 = vector.load %arg7[%c0_71, %c0_72] : memref<8x128xf32, #tpu.memory_space<vmem>>, vector<8x128xf32>
    %210 = arith.addf %208, %209 : vector<8x128xf32>
    %c0_73 = arith.constant 0 : index
    %c0_74 = arith.constant 0 : index
    %211 = vector.load %arg8[%c0_73, %c0_74] : memref<8x128xf32, #tpu.memory_space<vmem>>, vector<8x128xf32>
    tpu.vector_store %arg8[%c0_73, %c0_74], %210 {strides = array<i32>} : memref<8x128xf32, #tpu.memory_space<vmem>>, vector<8x128xf32>,
    return
  }
}

</mosaic_0001>

<bundles_post_ra>
// kernel: tpu_custom_call.1
= control target key start
LH: loop header
LB: loop body
LE: loop exit
PB: predicated region body
PF: predicated region fallthrough
CT: control target
= control target key end

     0   :  { %13 = vsyncpa [#allocation3], 0  ;;  %s1922_s0 = inlined_call_operand.vmem [shape: f32[128,128], index: 0, kind: input, shape index: {}]   ;;  %s1923_s1 = inlined_call_operand.vmem [shape: f32[128,32], index: 1, kind: input, shape index: {}]   ;;  %s1924_s2 = inlined_call_operand.hbm [shape: f32[16,32], index: 2, kind: input, shape index: {}]   ;;  %s1925_s3 = inlined_call_operand.vmem [shape: f32[32,128], index: 3, kind: input, shape index: {}]   ;;  %s1926_s4 = inlined_call_operand.hbm [shape: f32[32,32], index: 4, kind: input, shape index: {}]   ;;  %s1927_s5 = inlined_call_operand.hbm [shape: f32[8,32], index: 5, kind: input, shape index: {}]   ;;  %s1928_s6 = inlined_call_operand.hbm [shape: f32[32,128], index: 6, kind: input, shape index: {}]   ;;  %s1929_s7 = inlined_call_operand.hbm [shape: f32[8,128], index: 7, kind: input, shape index: {}]   ;;  %s1930_s8 = inlined_call_operand.hbm [shape: f32[8,128], index: 8, kind: output, shape index: {}]  }
   0x1   :  { %14 = vsyncpa [#allocation6], 0 }
   0x2   :  { %15 = vsyncpa [#allocation9], 0 }
   0x3   :  { %16 = vsyncpa [#allocation4], 0  ;;  %s40_s29 = sshll.u32 %s1926_s4, 4  ;;  %s1518_s30 = smov [#allocation5]   ;;  %s41_s29 = int_to_ptr.hbm [resolvable:$true] %s40_s29 }
   0x4   :  { %s42_s9 = sshll.u32 %s1518_s30, 4  ;;  %s64_s12 = sshll.u32 %s1928_s6, 4  ;;  %s43_s9 = int_to_ptr.vmem [resolvable:$true] %s42_s9  ;;  %s65_s12 = int_to_ptr.hbm [resolvable:$true] %s64_s12 }
   0x5   :  { %s1519_s13 = smov 128   ;;  %s1520_s14 = smov 8  }
   0x6   :  { %48 = dma.hbm_to_vmem [thread:$0]  %s41_s29, 512, %s43_s9, [#allocation6], %s1519_s13, %s1519_s13, %s1520_s14  }
   0x7   :  { %s1521_s15 = smov [#allocation8]   ;;  %s25_s19 = sshll.u32 %s1924_s2, 4  ;;  %s26_s19 = int_to_ptr.hbm [resolvable:$true] %s25_s19 }
   0x8   :  { %s66_s16 = sshll.u32 %s1521_s15, 4  ;;  %s54_s21 = sshll.u32 %s1927_s5, 4  ;;  %s67_s16 = int_to_ptr.vmem [resolvable:$true] %s66_s16  ;;  %s55_s21 = int_to_ptr.hbm [resolvable:$true] %s54_s21 }
   0x9   :  { %72 = dma.hbm_to_vmem [thread:$0]  %s65_s12, 512, %s67_s16, [#allocation9], %s1519_s13, %s1519_s13, %s1520_s14  }
   0xa   :  { %s1522_s22 = smov [#allocation2]   ;;  %s1523_s6 = smov [#allocation7]  }
   0xb   :  { %s27_s23 = sshll.u32 %s1522_s22, 4  ;;  %s56_s24 = sshll.u32 %s1523_s6, 4  ;;  %s28_s23 = int_to_ptr.vmem [resolvable:$true] %s27_s23  ;;  %s57_s24 = int_to_ptr.vmem [resolvable:$true] %s56_s24 }
   0xc   :  { %33 = dma.hbm_to_vmem [thread:$0]  %s26_s19, 256, %s28_s23, [#allocation3], %s1519_s13, %s1519_s13, %s1520_s14  }
   0xd   :  { %s78_s27 = sshll.u32 %s1929_s7, 4  ;;  %s1524_s2 = smov [#allocation10]   ;;  %s79_s27 = int_to_ptr.hbm [resolvable:$true] %s78_s27 }
   0xe   :  { %59 = dma.hbm_to_vmem [thread:$0]  %s55_s21, 128, %s57_s24, [#allocation6]  }
   0xf   :  { %s80_s28 = sshll.u32 %s1524_s2, 4  ;;  %s81_s28 = int_to_ptr.vmem [resolvable:$true] %s80_s28 }
  0x10   :  { %83 = dma.hbm_to_vmem [thread:$0]  %s79_s27, 128, %s81_s28, [#allocation9]  }
  0x11   :  { %1510 = dma.done.wait [#allocation3], 256  }
  0x12   :  { %1511 = vsyncadd [#allocation3], 4294967040 }
  0x13   :  { %1512 = dma.done.wait [#allocation6], 640  }
  0x14   :  { %1513 = vsyncadd [#allocation6], 4294966656 }
  0x15   :  { %1514 = dma.done.wait [#allocation9], 640  }
  0x16   :  { %1515 = vsyncadd [#allocation9], 4294966656  ;;  %v107_v0 = vld [vmem:[%s1925_s3 + $0x18] sm:$0xff]  ;;  %v106_v1 = vld [vmem:[%s1925_s3 + $0x10] sm:$0xff]  ;;  %v1525_v4 = vmov 0.0   ;;  %s1526_s16 = smov 64  }
  0x17   :  { %126 = vmatpush.msra.mxu0 %v107_v0  ;;  %253 = vmatpush.msra.mxu1 %v107_v0  ;;  %v105_v2 = vld [vmem:[%s1925_s3 + $0x8] sm:$0xff]  ;;  %v104_v3 = vld [vmem:[%s1925_s3] sm:$0xff]  ;;  %s1527_s17 = smov 32   ;;  %vm110_vm8 = vcmask 261120   ;;  %v229_v59 = vld [vmem:[%s1922_s0 + $0x10] sm:$0xff]  ;;  %s1528_s20 = smov 96  }
  0x18   :  { %380 = vmatpush.msra.mxu2 %v107_v0  ;;  %507 = vmatpush.msra.mxu3 %v107_v0  ;;  %v108_v5 = vld [vmem:[%s1922_s0] sm:$0xff]  ;;  %v109_v9 = vld [vmem:[%s1922_s0 + $0x8] sm:$0xff]  ;;  %v230_v63 = vld [vmem:[%s1922_s0 + $0x18] sm:$0xff]  ;;  %s1198_s24 = sshll.u32 %s1930_s8, 4  ;;  %s1199_s24 = int_to_ptr.hbm [resolvable:$true] %s1198_s24 }
  0x19   :  { %127 = vmatpush.msra.mxu0 %v106_v1  ;;  %254 = vmatpush.msra.mxu1 %v106_v1 }
  0x1a   :  { %381 = vmatpush.msra.mxu2 %v106_v1  ;;  %508 = vmatpush.msra.mxu3 %v106_v1 }
  0x1b   :  { %128 = vmatpush.msra.mxu0 %v105_v2  ;;  %255 = vmatpush.msra.mxu1 %v105_v2 }
  0x1c   :  { %382 = vmatpush.msra.mxu2 %v105_v2  ;;  %509 = vmatpush.msra.mxu3 %v105_v2 }
  0x1d   :  { %129 = vmatpush.msra.mxu0 %v104_v3  ;;  %256 = vmatpush.msra.mxu1 %v104_v3 }
  0x1e   :  { %130 = vmatmul.f32.vlgmr.msra.gmra.mxu0 %v1525_v4  ;;  %383 = vmatpush.msra.mxu2 %v104_v3 }
  0x1f   :  { %510 = vmatpush.msra.mxu3 %v104_v3  ;;  %634 = vmatpush.msrb.mxu0 %v107_v0 }
  0x20   :  { %761 = vmatpush.msrb.mxu1 %v107_v0  ;;  %888 = vmatpush.msrb.mxu2 %v107_v0 }
  0x21   :  { %635 = vmatpush.msrb.mxu0 %v106_v1  ;;  %1015 = vmatpush.msrb.mxu3 %v107_v0 }
  0x22   :  { %762 = vmatpush.msrb.mxu1 %v106_v1  ;;  %889 = vmatpush.msrb.mxu2 %v106_v1 }
  0x23   :  { %636 = vmatpush.msrb.mxu0 %v105_v2  ;;  %1016 = vmatpush.msrb.mxu3 %v106_v1 }
  0x24   :  { %763 = vmatpush.msrb.mxu1 %v105_v2  ;;  %890 = vmatpush.msrb.mxu2 %v105_v2 }
  0x25   :  { %637 = vmatpush.msrb.mxu0 %v104_v3  ;;  %1017 = vmatpush.msrb.mxu3 %v105_v2 }
  0x26   :  { %133 = vmatmul.f32.gmra.mxu0 %v1525_v4  ;;  %764 = vmatpush.msrb.mxu1 %v104_v3 }
  0x27   :  { %891 = vmatpush.msrb.mxu2 %v104_v3  ;;  %1018 = vmatpush.msrb.mxu3 %v104_v3 }
  0x9b   :  { %v131_v6 = vpop.f32.mrf.mxu0 }
  0x9c   :  { %v137_v7 = vadd.f32 %v131_v6, %v108_v5 }
  0x9e   :  { %v1210_v8 = vmul.f32 -1.442695, %v137_v7 }
  0xa0   :  { %1270 = vpow2.f32 %v1210_v8 }
  0xa3   :  { %v134_v10 = vpop.f32.mrf.mxu0 }
  0xa4   :  { %v138_v11 = vadd.f32 %v134_v10, %v109_v9 }
  0xa6   :  { %v1271_v12 = vpop.eup %1270  ;;  %v1211_v13 = vmul.f32 -1.442695, %v138_v11 }
  0xa7   :  { %v145_v14 = vadd.f32 1.0, %v1271_v12 }
  0xa8   :  { %1272 = vpow2.f32 %v1211_v13 }
  0xa9   :  { %1274 = vrcp.f32 %v145_v14  ;;  %v158_v20 = vand.u32 2147483648, %v145_v14  ;;  %v156_v22 = vand.u32 2147483647, %v145_v14  ;;  %vm152_vm1 = vweird.f32 %v145_v14 }
  0xab   :  { %v159_v25 = vor.u32 1.1754944e-38, %v158_v20  ;;  %vm157_vm3 = vcmp.eq.f32.partialorder %v156_v22, 8.507059e+37 }
  0xae   :  { %v1273_v15 = vpop.eup %1272 }
  0xaf   :  { %v1275_v16 = vpop.eup %1274  ;;  %v146_v17 = vadd.f32 1.0, %v1273_v15 }
  0xb0   :  { %v148_v18 = vmul.f32 %v1275_v16, %v145_v14  ;;  %vm153_vm0 = vweird.f32 %v1275_v16 }
  0xb1   :  { %1276 = vrcp.f32 %v146_v17  ;;  %vm154_vm2 = vmor %vm152_vm1, %vm153_vm0  ;;  %v173_v31 = vand.u32 2147483648, %v146_v17  ;;  %v171_v34 = vand.u32 2147483647, %v146_v17  ;;  %vm167_vm5 = vweird.f32 %v146_v17 }
  0xb2   :  { %v149_v19 = vsub.f32 1.0, %v148_v18 }
  0xb3   :  { %v174_v36 = vor.u32 1.1754944e-38, %v173_v31  ;;  %vm172_vm7 = vcmp.eq.f32.partialorder %v171_v34, 8.507059e+37 }
  0xb4   :  { %v150_v21 = vmul.f32 %v1275_v16, %v149_v19 }
  0xb6   :  { %v151_v23 = vadd.f32 %v1275_v16, %v150_v21 }
  0xb7   :  { %v1277_v24 = vpop.eup %1276 }
  0xb8   :  { %v163_v26 = vmul.f32 %v1277_v24, %v146_v17  ;;  %v155_v27 = vsel %vm154_vm2, %v1275_v16, %v151_v23  ;;  %vm168_vm4 = vweird.f32 %v1277_v24 }
  0xb9   :  { %v160_v28 = vsel %vm157_vm3, %v159_v25, %v155_v27  ;;  %vm169_vm6 = vmor %vm167_vm5, %vm168_vm4 }
  0xba   :  { %v164_v29 = vsub.f32 1.0, %v163_v26  ;;  %v177_v30 = vmul.f32 2.0, %v160_v28  ;;  %v181_v45 = vmul.f32 0.0, %v160_v28 }
  0xbc   :  { %v1212_v32 = vadd.f32 -1.0, %v177_v30  ;;  %v165_v33 = vmul.f32 %v1277_v24, %v164_v29 }
  0xbe   :  { %185 = vrot.lane.b32.xlu0 %v1212_v32, %s1526_s16  ;;  %v166_v35 = vadd.f32 %v1277_v24, %v165_v33 }
  0xc0   :  { %v170_v37 = vsel %vm169_vm6, %v1277_v24, %v166_v35 }
  0xc1   :  { %v175_v38 = vsel %vm172_vm7, %v174_v36, %v170_v37 }
  0xc2   :  { %v178_v39 = vmul.f32 2.0, %v175_v38  ;;  %v182_v48 = vmul.f32 0.0, %v175_v38 }
  0xc4   :  { %v1213_v40 = vadd.f32 -1.0, %v178_v39 }
  0xc6   :  { %187 = vrot.lane.b32.xlu0 %v1213_v40, %s1526_s16 }
 0x130   :  { %v186_v41 = vpop.permute.xlu0 %185 }
 0x131   :  { %v191_v42 = vmul.f32 %v186_v41, %v160_v28 }
 0x133   :  { %195 = vrot.lane.b32.xlu1 %v191_v42, %s1527_s17 }
 0x138   :  { %v188_v43 = vpop.permute.xlu0 %187 }
 0x139   :  { %v192_v44 = vmul.f32 %v188_v43, %v175_v38 }
 0x13b   :  { %197 = vrot.lane.b32.xlu1 %v192_v44, %s1527_s17 }
 0x1a5   :  { %v196_v46 = vpop.permute.xlu1 %195 }
 0x1a6   :  { %v1612_v47 = vadd.f32 %v196_v46, %v181_v45 }
 0x1a8   :  { %1278 = vtanh.f32 %v1612_v47 }
 0x1ad   :  { %v198_v49 = vpop.permute.xlu1 %197 }
 0x1ae   :  { %v1279_v50 = vpop.eup %1278  ;;  %v1615_v51 = vadd.f32 %v198_v49, %v182_v48  ;;  %v356_v49 = vld [vmem:[%s1922_s0 + $0x20] sm:$0xff] }
 0x1af   :  { %207 = vrot.lane.b32.xlu2 %v1279_v50, %s1526_s16 }
 0x1b0   :  { %1280 = vtanh.f32 %v1615_v51 }
 0x1b6   :  { %v1281_v52 = vpop.eup %1280 }
 0x1b7   :  { %209 = vrot.lane.b32.xlu2 %v1281_v52, %s1526_s16 }
 0x209   :  { %v208_v53 = vpop.permute.xlu2 %207 }
 0x20a   :  { %v1620_v54 = vmul.f32 %v208_v53, %v160_v28 }
 0x20c   :  { %233 = vrot.lane.b32.xlu0 %v1620_v54, %s1527_s17 }
 0x211   :  { %v210_v55 = vpop.permute.xlu2 %209 }
 0x212   :  { %v1624_v56 = vmul.f32 %v210_v55, %v175_v38 }
 0x214   :  { %235 = vrot.lane.b32.xlu1 %v1624_v56, %s1527_s17 }
 0x27e   :  { %v234_v57 = vpop.permute.xlu0 %233 }
 0x27f   :  { %1214 = vmatmul.msk.f32.vlgmr.msra.gmra.mxu1 %vm110_vm8, %v234_v57 }
 0x286   :  { %v236_v58 = vpop.permute.xlu1 %235 }
 0x287   :  { %1215 = vmatmul.msk.f32.gmra.mxu1 %vm110_vm8, %v236_v58 }
 0x2fc   :  { %v258_v60 = vpop.f32.mrf.mxu1 }
 0x2fd   :  { %v264_v61 = vadd.f32 %v258_v60, %v229_v59 }
 0x2ff   :  { %v1216_v62 = vmul.f32 -1.442695, %v264_v61 }
 0x301   :  { %1282 = vpow2.f32 %v1216_v62 }
 0x304   :  { %v261_v0 = vpop.f32.mrf.mxu1 }
 0x305   :  { %v265_v1 = vadd.f32 %v261_v0, %v230_v63 }
 0x307   :  { %v1283_v2 = vpop.eup %1282  ;;  %v1217_v3 = vmul.f32 -1.442695, %v265_v1 }
 0x308   :  { %v272_v4 = vadd.f32 1.0, %v1283_v2  ;;  %v357_v2 = vld [vmem:[%s1922_s0 + $0x28] sm:$0xff] }
 0x309   :  { %1284 = vpow2.f32 %v1217_v3 }
 0x30a   :  { %1286 = vrcp.f32 %v272_v4  ;;  %v285_v10 = vand.u32 2147483648, %v272_v4  ;;  %v283_v12 = vand.u32 2147483647, %v272_v4  ;;  %vm279_vm10 = vweird.f32 %v272_v4 }
 0x30c   :  { %v286_v15 = vor.u32 1.1754944e-38, %v285_v10  ;;  %vm284_vm12 = vcmp.eq.f32.partialorder %v283_v12, 8.507059e+37 }
 0x30f   :  { %v1285_v5 = vpop.eup %1284 }
 0x310   :  { %v1287_v6 = vpop.eup %1286  ;;  %v273_v7 = vadd.f32 1.0, %v1285_v5 }
 0x311   :  { %v275_v8 = vmul.f32 %v1287_v6, %v272_v4  ;;  %vm280_vm9 = vweird.f32 %v1287_v6 }
 0x312   :  { %1288 = vrcp.f32 %v273_v7  ;;  %vm281_vm11 = vmor %vm279_vm10, %vm280_vm9  ;;  %v300_v21 = vand.u32 2147483648, %v273_v7  ;;  %v298_v24 = vand.u32 2147483647, %v273_v7  ;;  %vm294_vm14 = vweird.f32 %v273_v7 }
 0x313   :  { %v276_v9 = vsub.f32 1.0, %v275_v8 }
 0x314   :  { %v301_v26 = vor.u32 1.1754944e-38, %v300_v21  ;;  %vm299_vm0 = vcmp.eq.f32.partialorder %v298_v24, 8.507059e+37 }
 0x315   :  { %v277_v11 = vmul.f32 %v1287_v6, %v276_v9 }
 0x317   :  { %v278_v13 = vadd.f32 %v1287_v6, %v277_v11 }
 0x318   :  { %v1289_v14 = vpop.eup %1288 }
 0x319   :  { %v290_v16 = vmul.f32 %v1289_v14, %v273_v7  ;;  %v282_v17 = vsel %vm281_vm11, %v1287_v6, %v278_v13  ;;  %vm295_vm13 = vweird.f32 %v1289_v14 }
 0x31a   :  { %v287_v18 = vsel %vm284_vm12, %v286_v15, %v282_v17  ;;  %vm296_vm15 = vmor %vm294_vm14, %vm295_vm13 }
 0x31b   :  { %v291_v19 = vsub.f32 1.0, %v290_v16  ;;  %v304_v20 = vmul.f32 2.0, %v287_v18  ;;  %v308_v35 = vmul.f32 %v287_v18, %v1612_v47 }
 0x31d   :  { %v1218_v22 = vadd.f32 -1.0, %v304_v20  ;;  %v292_v23 = vmul.f32 %v1289_v14, %v291_v19 }
 0x31f   :  { %312 = vrot.lane.b32.xlu2 %v1218_v22, %s1526_s16  ;;  %v293_v25 = vadd.f32 %v1289_v14, %v292_v23 }
 0x321   :  { %v297_v27 = vsel %vm296_vm15, %v1289_v14, %v293_v25 }
 0x322   :  { %v302_v28 = vsel %vm299_vm0, %v301_v26, %v297_v27 }
 0x323   :  { %v305_v29 = vmul.f32 2.0, %v302_v28  ;;  %v309_v38 = vmul.f32 %v302_v28, %v1615_v51 }
 0x325   :  { %v1219_v30 = vadd.f32 -1.0, %v305_v29 }
 0x327   :  { %314 = vrot.lane.b32.xlu0 %v1219_v30, %s1526_s16 }
 0x379   :  { %v313_v31 = vpop.permute.xlu2 %312 }
 0x37a   :  { %v318_v32 = vmul.f32 %v313_v31, %v287_v18 }
 0x37c   :  { %322 = vrot.lane.b32.xlu1 %v318_v32, %s1527_s17 }
 0x399   :  { %v315_v33 = vpop.permute.xlu0 %314 }
 0x39a   :  { %v319_v34 = vmul.f32 %v315_v33, %v302_v28 }
 0x39c   :  { %324 = vrot.lane.b32.xlu2 %v319_v34, %s1527_s17 }
 0x3ee   :  { %v323_v36 = vpop.permute.xlu1 %322 }
 0x3ef   :  { %v1641_v37 = vadd.f32 %v323_v36, %v308_v35 }
 0x3f1   :  { %1290 = vtanh.f32 %v1641_v37 }
 0x3f6   :  { %v325_v39 = vpop.permute.xlu2 %324 }
 0x3f7   :  { %v1291_v40 = vpop.eup %1290  ;;  %v1645_v41 = vadd.f32 %v325_v39, %v309_v38 }
 0x3f8   :  { %334 = vrot.lane.b32.xlu0 %v1291_v40, %s1526_s16 }
 0x3f9   :  { %1292 = vtanh.f32 %v1645_v41 }
 0x3ff   :  { %v1293_v42 = vpop.eup %1292 }
 0x400   :  { %336 = vrot.lane.b32.xlu1 %v1293_v42, %s1526_s16 }
 0x46a   :  { %v335_v43 = vpop.permute.xlu0 %334 }
 0x46b   :  { %v1650_v44 = vmul.f32 %v335_v43, %v287_v18 }
 0x46d   :  { %360 = vrot.lane.b32.xlu2 %v1650_v44, %s1527_s17 }
 0x472   :  { %v337_v45 = vpop.permute.xlu1 %336 }
 0x473   :  { %v1654_v46 = vmul.f32 %v337_v45, %v302_v28 }
 0x475   :  { %362 = vrot.lane.b32.xlu0 %v1654_v46, %s1527_s17 }
 0x4c7   :  { %v361_v47 = vpop.permute.xlu2 %360 }
 0x4c8   :  { %1220 = vmatmul.msk.f32.vlgmr.msra.gmra.mxu2 %vm110_vm8, %v361_v47  ;;  %v484_v47 = vld [vmem:[%s1922_s0 + $0x38] sm:$0xff] }
 0x4e7   :  { %v363_v48 = vpop.permute.xlu0 %362 }
 0x4e8   :  { %1221 = vmatmul.msk.f32.gmra.mxu2 %vm110_vm8, %v363_v48 }
 0x54b   :  { %v385_v50 = vpop.f32.mrf.mxu2 }
 0x54c   :  { %v391_v51 = vadd.f32 %v385_v50, %v356_v49 }
 0x54e   :  { %v1222_v52 = vmul.f32 -1.442695, %v391_v51 }
 0x550   :  { %1294 = vpow2.f32 %v1222_v52 }
 0x556   :  { %v1295_v53 = vpop.eup %1294 }
 0x557   :  { %v399_v55 = vadd.f32 1.0, %v1295_v53 }
 0x559   :  { %1296 = vrcp.f32 %v399_v55  ;;  %v412_v60 = vand.u32 2147483648, %v399_v55  ;;  %v410_v62 = vand.u32 2147483647, %v399_v55  ;;  %vm406_vm2 = vweird.f32 %v399_v55 }
 0x55b   :  { %v413_v0 = vor.u32 1.1754944e-38, %v412_v60  ;;  %vm411_vm4 = vcmp.eq.f32.partialorder %v410_v62, 8.507059e+37 }
 0x55f   :  { %v1297_v57 = vpop.eup %1296 }
 0x560   :  { %v402_v58 = vmul.f32 %v1297_v57, %v399_v55  ;;  %vm407_vm1 = vweird.f32 %v1297_v57 }
 0x561   :  { %vm408_vm3 = vmor %vm406_vm2, %vm407_vm1 }
 0x562   :  { %v403_v59 = vsub.f32 1.0, %v402_v58 }
 0x564   :  { %v404_v61 = vmul.f32 %v1297_v57, %v403_v59 }
 0x566   :  { %v405_v63 = vadd.f32 %v1297_v57, %v404_v61 }
 0x568   :  { %v409_v1 = vsel %vm408_vm3, %v1297_v57, %v405_v63 }
 0x569   :  { %v414_v3 = vsel %vm411_vm4, %v413_v0, %v409_v1 }
 0x56a   :  { %v431_v4 = vmul.f32 2.0, %v414_v3  ;;  %v435_v27 = vmul.f32 %v414_v3, %v1641_v37 }
 0x56b   :  { %v388_v5 = vpop.f32.mrf.mxu2 }
 0x56c   :  { %v392_v6 = vadd.f32 %v388_v5, %v357_v2  ;;  %v1224_v7 = vadd.f32 -1.0, %v431_v4 }
 0x56e   :  { %v1223_v8 = vmul.f32 -1.442695, %v392_v6  ;;  %439 = vrot.lane.b32.xlu1 %v1224_v7, %s1526_s16 }
 0x570   :  { %1298 = vpow2.f32 %v1223_v8 }
 0x576   :  { %v1299_v9 = vpop.eup %1298 }
 0x577   :  { %v400_v10 = vadd.f32 1.0, %v1299_v9 }
 0x579   :  { %1300 = vrcp.f32 %v400_v10  ;;  %v427_v14 = vand.u32 2147483648, %v400_v10  ;;  %v425_v16 = vand.u32 2147483647, %v400_v10  ;;  %vm421_vm6 = vweird.f32 %v400_v10 }
 0x57b   :  { %v428_v18 = vor.u32 1.1754944e-38, %v427_v14  ;;  %vm426_vm9 = vcmp.eq.f32.partialorder %v425_v16, 8.507059e+37 }
 0x57f   :  { %v1301_v11 = vpop.eup %1300 }
 0x580   :  { %v417_v12 = vmul.f32 %v1301_v11, %v400_v10  ;;  %vm422_vm5 = vweird.f32 %v1301_v11 }
 0x581   :  { %vm423_vm7 = vmor %vm421_vm6, %vm422_vm5 }
 0x582   :  { %v418_v13 = vsub.f32 1.0, %v417_v12 }
 0x584   :  { %v419_v15 = vmul.f32 %v1301_v11, %v418_v13 }
 0x586   :  { %v420_v17 = vadd.f32 %v1301_v11, %v419_v15 }
 0x588   :  { %v424_v19 = vsel %vm423_vm7, %v1301_v11, %v420_v17 }
 0x589   :  { %v429_v20 = vsel %vm426_vm9, %v428_v18, %v424_v19 }
 0x58a   :  { %v432_v21 = vmul.f32 2.0, %v429_v20  ;;  %v436_v30 = vmul.f32 %v429_v20, %v1645_v41  ;;  %v483_v41 = vld [vmem:[%s1922_s0 + $0x30] sm:$0xff] }
 0x58c   :  { %v1225_v22 = vadd.f32 -1.0, %v432_v21 }
 0x58e   :  { %441 = vrot.lane.b32.xlu2 %v1225_v22, %s1526_s16 }
 0x5e0   :  { %v440_v23 = vpop.permute.xlu1 %439 }
 0x5e1   :  { %v445_v24 = vmul.f32 %v440_v23, %v414_v3 }
 0x5e3   :  { %449 = vrot.lane.b32.xlu0 %v445_v24, %s1527_s17 }
 0x5e8   :  { %v442_v25 = vpop.permute.xlu2 %441 }
 0x5e9   :  { %v446_v26 = vmul.f32 %v442_v25, %v429_v20 }
 0x5eb   :  { %451 = vrot.lane.b32.xlu1 %v446_v26, %s1527_s17 }
 0x655   :  { %v450_v28 = vpop.permute.xlu0 %449 }
 0x656   :  { %v1671_v29 = vadd.f32 %v450_v28, %v435_v27 }
 0x658   :  { %1302 = vtanh.f32 %v1671_v29 }
 0x65d   :  { %v452_v31 = vpop.permute.xlu1 %451 }
 0x65e   :  { %v1303_v32 = vpop.eup %1302  ;;  %v1675_v33 = vadd.f32 %v452_v31, %v436_v30 }
 0x65f   :  { %461 = vrot.lane.b32.xlu2 %v1303_v32, %s1526_s16 }
 0x660   :  { %1304 = vtanh.f32 %v1675_v33 }
 0x666   :  { %v1305_v34 = vpop.eup %1304 }
 0x667   :  { %463 = vrot.lane.b32.xlu0 %v1305_v34, %s1526_s16 }
 0x6b9   :  { %v462_v35 = vpop.permute.xlu2 %461 }
 0x6ba   :  { %v1680_v36 = vmul.f32 %v462_v35, %v414_v3  ;;  %v610_v35 = vld [vmem:[%s1922_s0 + $0x40] sm:$0xff] }
 0x6bc   :  { %487 = vrot.lane.b32.xlu1 %v1680_v36, %s1527_s17 }
 0x6d9   :  { %v464_v37 = vpop.permute.xlu0 %463 }
 0x6da   :  { %v1684_v38 = vmul.f32 %v464_v37, %v429_v20 }
 0x6dc   :  { %489 = vrot.lane.b32.xlu2 %v1684_v38, %s1527_s17 }
 0x72e   :  { %v488_v39 = vpop.permute.xlu1 %487 }
 0x72f   :  { %1226 = vmatmul.msk.f32.vlgmr.msra.gmra.mxu3 %vm110_vm8, %v488_v39 }
 0x736   :  { %v490_v40 = vpop.permute.xlu2 %489 }
 0x737   :  { %1227 = vmatmul.msk.f32.gmra.mxu3 %vm110_vm8, %v490_v40 }
 0x7b2   :  { %v512_v42 = vpop.f32.mrf.mxu3 }
 0x7b3   :  { %v518_v43 = vadd.f32 %v512_v42, %v483_v41  ;;  %v611_v41 = vld [vmem:[%s1922_s0 + $0x48] sm:$0xff] }
 0x7b5   :  { %v1228_v45 = vmul.f32 -1.442695, %v518_v43 }
 0x7b7   :  { %1306 = vpow2.f32 %v1228_v45 }
 0x7ba   :  { %v515_v48 = vpop.f32.mrf.mxu3 }
 0x7bb   :  { %v519_v49 = vadd.f32 %v515_v48, %v484_v47 }
 0x7bd   :  { %v1307_v50 = vpop.eup %1306  ;;  %v1229_v51 = vmul.f32 -1.442695, %v519_v49 }
 0x7be   :  { %v526_v52 = vadd.f32 1.0, %v1307_v50 }
 0x7bf   :  { %1308 = vpow2.f32 %v1229_v51 }
 0x7c0   :  { %1310 = vrcp.f32 %v526_v52  ;;  %v539_v60 = vand.u32 2147483648, %v526_v52  ;;  %v537_v62 = vand.u32 2147483647, %v526_v52  ;;  %vm533_vm11 = vweird.f32 %v526_v52 }
 0x7c2   :  { %v540_v1 = vor.u32 1.1754944e-38, %v539_v60  ;;  %vm538_vm13 = vcmp.eq.f32.partialorder %v537_v62, 8.507059e+37 }
 0x7c5   :  { %v1309_v53 = vpop.eup %1308 }
 0x7c6   :  { %v1311_v55 = vpop.eup %1310  ;;  %v527_v57 = vadd.f32 1.0, %v1309_v53 }
 0x7c7   :  { %v529_v58 = vmul.f32 %v1311_v55, %v526_v52  ;;  %vm534_vm10 = vweird.f32 %v1311_v55 }
 0x7c8   :  { %1312 = vrcp.f32 %v527_v57  ;;  %vm535_vm12 = vmor %vm533_vm11, %vm534_vm10  ;;  %v554_v7 = vand.u32 2147483648, %v527_v57  ;;  %v552_v10 = vand.u32 2147483647, %v527_v57  ;;  %vm548_vm15 = vweird.f32 %v527_v57 }
 0x7c9   :  { %v530_v59 = vsub.f32 1.0, %v529_v58 }
 0x7ca   :  { %v555_v12 = vor.u32 1.1754944e-38, %v554_v7  ;;  %vm553_vm1 = vcmp.eq.f32.partialorder %v552_v10, 8.507059e+37 }
 0x7cb   :  { %v531_v61 = vmul.f32 %v1311_v55, %v530_v59 }
 0x7cd   :  { %v532_v63 = vadd.f32 %v1311_v55, %v531_v61 }
 0x7ce   :  { %v1313_v0 = vpop.eup %1312 }
 0x7cf   :  { %v544_v2 = vmul.f32 %v1313_v0, %v527_v57  ;;  %v536_v3 = vsel %vm535_vm12, %v1311_v55, %v532_v63  ;;  %vm549_vm14 = vweird.f32 %v1313_v0 }
 0x7d0   :  { %v541_v4 = vsel %vm538_vm13, %v540_v1, %v536_v3  ;;  %vm550_vm0 = vmor %vm548_vm15, %vm549_vm14 }
 0x7d1   :  { %v545_v5 = vsub.f32 1.0, %v544_v2  ;;  %v558_v6 = vmul.f32 2.0, %v541_v4  ;;  %v562_v21 = vmul.f32 %v541_v4, %v1671_v29 }
 0x7d3   :  { %v1230_v8 = vadd.f32 -1.0, %v558_v6  ;;  %v546_v9 = vmul.f32 %v1313_v0, %v545_v5 }
 0x7d5   :  { %566 = vrot.lane.b32.xlu0 %v1230_v8, %s1526_s16  ;;  %v547_v11 = vadd.f32 %v1313_v0, %v546_v9 }
 0x7d7   :  { %v551_v13 = vsel %vm550_vm0, %v1313_v0, %v547_v11 }
 0x7d8   :  { %v556_v14 = vsel %vm553_vm1, %v555_v12, %v551_v13 }
 0x7d9   :  { %v559_v15 = vmul.f32 2.0, %v556_v14  ;;  %v563_v25 = vmul.f32 %v556_v14, %v1675_v33 }
 0x7db   :  { %v1231_v16 = vadd.f32 -1.0, %v559_v15 }
 0x7dd   :  { %568 = vrot.lane.b32.xlu1 %v1231_v16, %s1526_s16 }
 0x847   :  { %v567_v17 = vpop.permute.xlu0 %566 }
 0x848   :  { %v572_v18 = vmul.f32 %v567_v17, %v541_v4 }
 0x84a   :  { %576 = vrot.lane.b32.xlu2 %v572_v18, %s1527_s17 }
 0x84f   :  { %v569_v19 = vpop.permute.xlu1 %568 }
 0x850   :  { %v573_v20 = vmul.f32 %v569_v19, %v556_v14 }
 0x852   :  { %578 = vrot.lane.b32.xlu0 %v573_v20, %s1527_s17 }
 0x8a4   :  { %v577_v22 = vpop.permute.xlu2 %576 }
 0x8a5   :  { %v1701_v23 = vadd.f32 %v577_v22, %v562_v21 }
 0x8a7   :  { %1314 = vtanh.f32 %v1701_v23 }
 0x8ad   :  { %v1315_v24 = vpop.eup %1314 }
 0x8ae   :  { %588 = vrot.lane.b32.xlu1 %v1315_v24, %s1526_s16 }
 0x8c4   :  { %v579_v26 = vpop.permute.xlu0 %578 }
 0x8c5   :  { %v1706_v27 = vadd.f32 %v579_v26, %v563_v25 }
 0x8c7   :  { %1316 = vtanh.f32 %v1706_v27 }
 0x8cd   :  { %v1317_v28 = vpop.eup %1316 }
 0x8ce   :  { %590 = vrot.lane.b32.xlu2 %v1317_v28, %s1526_s16 }
 0x920   :  { %v589_v30 = vpop.permute.xlu1 %588 }
 0x921   :  { %v1710_v29 = vmul.f32 %v589_v30, %v541_v4 }
 0x923   :  { %614 = vrot.lane.b32.xlu0 %v1710_v29, %s1527_s17 }
 0x928   :  { %v591_v31 = vpop.permute.xlu2 %590 }
 0x929   :  { %v1714_v32 = vmul.f32 %v591_v31, %v556_v14 }
 0x92b   :  { %616 = vrot.lane.b32.xlu1 %v1714_v32, %s1527_s17 }
 0x995   :  { %v615_v33 = vpop.permute.xlu0 %614 }
 0x996   :  { %1232 = vmatmul.msk.f32.vlgmr.msrb.gmra.mxu0 %vm110_vm8, %v615_v33  ;;  %v737_v33 = vld [vmem:[%s1922_s0 + $0x50] sm:$0xff] }
 0x99d   :  { %v617_v34 = vpop.permute.xlu1 %616 }
 0x99e   :  { %1233 = vmatmul.msk.f32.gmra.mxu0 %vm110_vm8, %v617_v34 }
 0xa13   :  { %v639_v37 = vpop.f32.mrf.mxu0 }
 0xa14   :  { %v645_v39 = vadd.f32 %v639_v37, %v610_v35 }
 0xa16   :  { %v1234_v40 = vmul.f32 -1.442695, %v645_v39 }
 0xa18   :  { %1318 = vpow2.f32 %v1234_v40 }
 0xa1b   :  { %v642_v42 = vpop.f32.mrf.mxu0 }
 0xa1c   :  { %v646_v43 = vadd.f32 %v642_v42, %v611_v41 }
 0xa1e   :  { %v1319_v45 = vpop.eup %1318  ;;  %v1235_v47 = vmul.f32 -1.442695, %v646_v43 }
 0xa1f   :  { %v653_v48 = vadd.f32 1.0, %v1319_v45 }
 0xa20   :  { %1320 = vpow2.f32 %v1235_v47 }
 0xa21   :  { %1322 = vrcp.f32 %v653_v48  ;;  %v666_v55 = vand.u32 2147483648, %v653_v48  ;;  %v664_v58 = vand.u32 2147483647, %v653_v48  ;;  %vm660_vm3 = vweird.f32 %v653_v48 }
 0xa23   :  { %v667_v61 = vor.u32 1.1754944e-38, %v666_v55  ;;  %vm665_vm5 = vcmp.eq.f32.partialorder %v664_v58, 8.507059e+37 }
 0xa26   :  { %v1321_v49 = vpop.eup %1320 }
 0xa27   :  { %v1323_v50 = vpop.eup %1322  ;;  %v654_v51 = vadd.f32 1.0, %v1321_v49 }
 0xa28   :  { %v656_v52 = vmul.f32 %v1323_v50, %v653_v48  ;;  %vm661_vm2 = vweird.f32 %v1323_v50 }
 0xa29   :  { %1324 = vrcp.f32 %v654_v51  ;;  %vm662_vm4 = vmor %vm660_vm3, %vm661_vm2  ;;  %v681_v3 = vand.u32 2147483648, %v654_v51  ;;  %v679_v6 = vand.u32 2147483647, %v654_v51  ;;  %vm675_vm7 = vweird.f32 %v654_v51 }
 0xa2a   :  { %v657_v53 = vsub.f32 1.0, %v656_v52  ;;  %v738_v52 = vld [vmem:[%s1922_s0 + $0x58] sm:$0xff] }
 0xa2b   :  { %v682_v8 = vor.u32 1.1754944e-38, %v681_v3  ;;  %vm680_vm10 = vcmp.eq.f32.partialorder %v679_v6, 8.507059e+37 }
 0xa2c   :  { %v658_v57 = vmul.f32 %v1323_v50, %v657_v53 }
 0xa2e   :  { %v659_v59 = vadd.f32 %v1323_v50, %v658_v57 }
 0xa2f   :  { %v1325_v60 = vpop.eup %1324 }
 0xa30   :  { %v671_v62 = vmul.f32 %v1325_v60, %v654_v51  ;;  %v663_v63 = vsel %vm662_vm4, %v1323_v50, %v659_v59  ;;  %vm676_vm6 = vweird.f32 %v1325_v60 }
 0xa31   :  { %v668_v0 = vsel %vm665_vm5, %v667_v61, %v663_v63  ;;  %vm677_vm9 = vmor %vm675_vm7, %vm676_vm6 }
 0xa32   :  { %v672_v1 = vsub.f32 1.0, %v671_v62  ;;  %v685_v2 = vmul.f32 2.0, %v668_v0  ;;  %v689_v17 = vmul.f32 %v668_v0, %v1701_v23 }
 0xa34   :  { %v1236_v4 = vadd.f32 -1.0, %v685_v2  ;;  %v673_v5 = vmul.f32 %v1325_v60, %v672_v1 }
 0xa36   :  { %693 = vrot.lane.b32.xlu2 %v1236_v4, %s1526_s16  ;;  %v674_v7 = vadd.f32 %v1325_v60, %v673_v5 }
 0xa38   :  { %v678_v9 = vsel %vm677_vm9, %v1325_v60, %v674_v7 }
 0xa39   :  { %v683_v10 = vsel %vm680_vm10, %v682_v8, %v678_v9 }
 0xa3a   :  { %v686_v11 = vmul.f32 2.0, %v683_v10  ;;  %v690_v20 = vmul.f32 %v683_v10, %v1706_v27 }
 0xa3c   :  { %v1237_v12 = vadd.f32 -1.0, %v686_v11 }
 0xa3e   :  { %695 = vrot.lane.b32.xlu0 %v1237_v12, %s1526_s16 }
 0xa90   :  { %v694_v13 = vpop.permute.xlu2 %693 }
 0xa91   :  { %v699_v14 = vmul.f32 %v694_v13, %v668_v0 }
 0xa93   :  { %703 = vrot.lane.b32.xlu1 %v699_v14, %s1527_s17 }
 0xab0   :  { %v696_v15 = vpop.permute.xlu0 %695 }
 0xab1   :  { %v700_v16 = vmul.f32 %v696_v15, %v683_v10 }
 0xab3   :  { %705 = vrot.lane.b32.xlu2 %v700_v16, %s1527_s17 }
 0xb05   :  { %v704_v18 = vpop.permute.xlu1 %703 }
 0xb06   :  { %v1731_v19 = vadd.f32 %v704_v18, %v689_v17 }
 0xb08   :  { %1326 = vtanh.f32 %v1731_v19 }
 0xb0d   :  { %v706_v21 = vpop.permute.xlu2 %705 }
 0xb0e   :  { %v1327_v22 = vpop.eup %1326  ;;  %v1735_v24 = vadd.f32 %v706_v21, %v690_v20 }
 0xb0f   :  { %715 = vrot.lane.b32.xlu0 %v1327_v22, %s1526_s16 }
 0xb10   :  { %1328 = vtanh.f32 %v1735_v24 }
 0xb16   :  { %v1329_v25 = vpop.eup %1328 }
 0xb17   :  { %717 = vrot.lane.b32.xlu1 %v1329_v25, %s1526_s16 }
 0xb81   :  { %v716_v26 = vpop.permute.xlu0 %715 }
 0xb82   :  { %v1740_v23 = vmul.f32 %v716_v26, %v668_v0 }
 0xb84   :  { %741 = vrot.lane.b32.xlu2 %v1740_v23, %s1527_s17 }
 0xb89   :  { %v718_v28 = vpop.permute.xlu1 %717 }
 0xb8a   :  { %v1744_v30 = vmul.f32 %v718_v28, %v683_v10 }
 0xb8c   :  { %743 = vrot.lane.b32.xlu0 %v1744_v30, %s1527_s17 }
 0xbde   :  { %v742_v27 = vpop.permute.xlu2 %741 }
 0xbdf   :  { %1238 = vmatmul.msk.f32.vlgmr.msrb.gmra.mxu1 %vm110_vm8, %v742_v27 }
 0xbfe   :  { %v744_v31 = vpop.permute.xlu0 %743 }
 0xbff   :  { %1239 = vmatmul.msk.f32.gmra.mxu1 %vm110_vm8, %v744_v31 }
 0xc5c   :  { %v766_v34 = vpop.f32.mrf.mxu1 }
 0xc5d   :  { %v772_v35 = vadd.f32 %v766_v34, %v737_v33  ;;  %v864_v33 = vld [vmem:[%s1922_s0 + $0x60] sm:$0xff] }
 0xc5f   :  { %v1240_v37 = vmul.f32 -1.442695, %v772_v35 }
 0xc61   :  { %1330 = vpow2.f32 %v1240_v37 }
 0xc67   :  { %v1331_v39 = vpop.eup %1330 }
 0xc68   :  { %v780_v40 = vadd.f32 1.0, %v1331_v39  ;;  %v865_v39 = vld [vmem:[%s1922_s0 + $0x68] sm:$0xff] }
 0xc6a   :  { %1332 = vrcp.f32 %v780_v40  ;;  %v793_v45 = vand.u32 2147483648, %v780_v40  ;;  %v791_v48 = vand.u32 2147483647, %v780_v40  ;;  %vm787_vm12 = vweird.f32 %v780_v40 }
 0xc6c   :  { %v794_v50 = vor.u32 1.1754944e-38, %v793_v45  ;;  %vm792_vm14 = vcmp.eq.f32.partialorder %v791_v48, 8.507059e+37 }
 0xc70   :  { %v1333_v41 = vpop.eup %1332 }
 0xc71   :  { %v783_v42 = vmul.f32 %v1333_v41, %v780_v40  ;;  %vm788_vm11 = vweird.f32 %v1333_v41 }
 0xc72   :  { %vm789_vm13 = vmor %vm787_vm12, %vm788_vm11 }
 0xc73   :  { %v784_v43 = vsub.f32 1.0, %v783_v42 }
 0xc75   :  { %v785_v47 = vmul.f32 %v1333_v41, %v784_v43 }
 0xc77   :  { %v786_v49 = vadd.f32 %v1333_v41, %v785_v47 }
 0xc79   :  { %v790_v51 = vsel %vm789_vm13, %v1333_v41, %v786_v49 }
 0xc7a   :  { %v795_v53 = vsel %vm792_vm14, %v794_v50, %v790_v51 }
 0xc7b   :  { %v812_v55 = vmul.f32 2.0, %v795_v53  ;;  %v816_v15 = vmul.f32 %v795_v53, %v1731_v19 }
 0xc7c   :  { %v769_v57 = vpop.f32.mrf.mxu1 }
 0xc7d   :  { %v773_v58 = vadd.f32 %v769_v57, %v738_v52  ;;  %v1242_v59 = vadd.f32 -1.0, %v812_v55 }
 0xc7f   :  { %v1241_v60 = vmul.f32 -1.442695, %v773_v58  ;;  %820 = vrot.lane.b32.xlu1 %v1242_v59, %s1526_s16 }
 0xc81   :  { %1334 = vpow2.f32 %v1241_v60 }
 0xc87   :  { %v1335_v61 = vpop.eup %1334 }
 0xc88   :  { %v781_v62 = vadd.f32 1.0, %v1335_v61 }
 0xc8a   :  { %1336 = vrcp.f32 %v781_v62  ;;  %v808_v2 = vand.u32 2147483648, %v781_v62  ;;  %v806_v4 = vand.u32 2147483647, %v781_v62  ;;  %vm802_vm0 = vweird.f32 %v781_v62 }
 0xc8c   :  { %v809_v6 = vor.u32 1.1754944e-38, %v808_v2  ;;  %vm807_vm2 = vcmp.eq.f32.partialorder %v806_v4, 8.507059e+37 }
 0xc90   :  { %v1337_v63 = vpop.eup %1336 }
 0xc91   :  { %v798_v0 = vmul.f32 %v1337_v63, %v781_v62  ;;  %vm803_vm15 = vweird.f32 %v1337_v63 }
 0xc92   :  { %vm804_vm1 = vmor %vm802_vm0, %vm803_vm15 }
 0xc93   :  { %v799_v1 = vsub.f32 1.0, %v798_v0 }
 0xc95   :  { %v800_v3 = vmul.f32 %v1337_v63, %v799_v1 }
 0xc97   :  { %v801_v5 = vadd.f32 %v1337_v63, %v800_v3 }
 0xc99   :  { %v805_v7 = vsel %vm804_vm1, %v1337_v63, %v801_v5 }
 0xc9a   :  { %v810_v8 = vsel %vm807_vm2, %v809_v6, %v805_v7 }
 0xc9b   :  { %v813_v9 = vmul.f32 2.0, %v810_v8  ;;  %v817_v18 = vmul.f32 %v810_v8, %v1735_v24 }
 0xc9d   :  { %v1243_v10 = vadd.f32 -1.0, %v813_v9 }
 0xc9f   :  { %822 = vrot.lane.b32.xlu2 %v1243_v10, %s1526_s16 }
 0xcf1   :  { %v821_v11 = vpop.permute.xlu1 %820 }
 0xcf2   :  { %v826_v12 = vmul.f32 %v821_v11, %v795_v53 }
 0xcf4   :  { %830 = vrot.lane.b32.xlu0 %v826_v12, %s1527_s17 }
 0xcf9   :  { %v823_v13 = vpop.permute.xlu2 %822 }
 0xcfa   :  { %v827_v14 = vmul.f32 %v823_v13, %v810_v8 }
 0xcfc   :  { %832 = vrot.lane.b32.xlu1 %v827_v14, %s1527_s17 }
 0xd66   :  { %v831_v16 = vpop.permute.xlu0 %830 }
 0xd67   :  { %v1761_v17 = vadd.f32 %v831_v16, %v816_v15 }
 0xd69   :  { %1338 = vtanh.f32 %v1761_v17 }
 0xd6e   :  { %v833_v20 = vpop.permute.xlu1 %832 }
 0xd6f   :  { %v1339_v21 = vpop.eup %1338  ;;  %v1765_v22 = vadd.f32 %v833_v20, %v817_v18 }
 0xd70   :  { %842 = vrot.lane.b32.xlu2 %v1339_v21, %s1526_s16 }
 0xd71   :  { %1340 = vtanh.f32 %v1765_v22 }
 0xd77   :  { %v1341_v25 = vpop.eup %1340 }
 0xd78   :  { %844 = vrot.lane.b32.xlu0 %v1341_v25, %s1526_s16 }
 0xdca   :  { %v843_v26 = vpop.permute.xlu2 %842 }
 0xdcb   :  { %v1770_v19 = vmul.f32 %v843_v26, %v795_v53 }
 0xdcd   :  { %868 = vrot.lane.b32.xlu1 %v1770_v19, %s1527_s17 }
 0xdea   :  { %v845_v28 = vpop.permute.xlu0 %844 }
 0xdeb   :  { %v1774_v27 = vmul.f32 %v845_v28, %v810_v8 }
 0xded   :  { %870 = vrot.lane.b32.xlu2 %v1774_v27, %s1527_s17 }
 0xe3f   :  { %v869_v24 = vpop.permute.xlu1 %868 }
 0xe40   :  { %1244 = vmatmul.msk.f32.vlgmr.msrb.gmra.mxu2 %vm110_vm8, %v869_v24 }
 0xe47   :  { %v871_v31 = vpop.permute.xlu2 %870 }
 0xe48   :  { %1245 = vmatmul.msk.f32.gmra.mxu2 %vm110_vm8, %v871_v31 }
 0xec3   :  { %v893_v34 = vpop.f32.mrf.mxu2 }
 0xec4   :  { %v899_v35 = vadd.f32 %v893_v34, %v864_v33 }
 0xec6   :  { %v1246_v37 = vmul.f32 -1.442695, %v899_v35  ;;  %v991_v35 = vld [vmem:[%s1922_s0 + $0x70] sm:$0xff] }
 0xec8   :  { %1342 = vpow2.f32 %v1246_v37 }
 0xecb   :  { %v896_v40 = vpop.f32.mrf.mxu2 }
 0xecc   :  { %v900_v41 = vadd.f32 %v896_v40, %v865_v39 }
 0xece   :  { %v1343_v42 = vpop.eup %1342  ;;  %v1247_v43 = vmul.f32 -1.442695, %v900_v41  ;;  %v992_v41 = vld [vmem:[%s1922_s0 + $0x78] sm:$0xff] }
 0xecf   :  { %v907_v45 = vadd.f32 1.0, %v1343_v42 }
 0xed0   :  { %1344 = vpow2.f32 %v1247_v43 }
 0xed1   :  { %1346 = vrcp.f32 %v907_v45  ;;  %v920_v52 = vand.u32 2147483648, %v907_v45  ;;  %v918_v55 = vand.u32 2147483647, %v907_v45  ;;  %vm914_vm4 = vweird.f32 %v907_v45 }
 0xed3   :  { %v921_v59 = vor.u32 1.1754944e-38, %v920_v52  ;;  %vm919_vm6 = vcmp.eq.f32.partialorder %v918_v55, 8.507059e+37 }
 0xed6   :  { %v1345_v47 = vpop.eup %1344 }
 0xed7   :  { %v1347_v48 = vpop.eup %1346  ;;  %v908_v49 = vadd.f32 1.0, %v1345_v47 }
 0xed8   :  { %v910_v50 = vmul.f32 %v1347_v48, %v907_v45  ;;  %vm915_vm3 = vweird.f32 %v1347_v48 }
 0xed9   :  { %1348 = vrcp.f32 %v908_v49  ;;  %vm916_vm5 = vmor %vm914_vm4, %vm915_vm3  ;;  %v935_v1 = vand.u32 2147483648, %v908_v49  ;;  %v933_v4 = vand.u32 2147483647, %v908_v49  ;;  %vm929_vm9 = vweird.f32 %v908_v49 }
 0xeda   :  { %v911_v51 = vsub.f32 1.0, %v910_v50 }
 0xedb   :  { %v936_v6 = vor.u32 1.1754944e-38, %v935_v1  ;;  %vm934_vm11 = vcmp.eq.f32.partialorder %v933_v4, 8.507059e+37 }
 0xedc   :  { %v912_v53 = vmul.f32 %v1347_v48, %v911_v51 }
 0xede   :  { %v913_v57 = vadd.f32 %v1347_v48, %v912_v53 }
 0xedf   :  { %v1349_v58 = vpop.eup %1348 }
 0xee0   :  { %v925_v60 = vmul.f32 %v1349_v58, %v908_v49  ;;  %v917_v61 = vsel %vm916_vm5, %v1347_v48, %v913_v57  ;;  %vm930_vm7 = vweird.f32 %v1349_v58 }
 0xee1   :  { %v922_v62 = vsel %vm919_vm6, %v921_v59, %v917_v61  ;;  %vm931_vm10 = vmor %vm929_vm9, %vm930_vm7 }
 0xee2   :  { %v926_v63 = vsub.f32 1.0, %v925_v60  ;;  %v939_v0 = vmul.f32 2.0, %v922_v62  ;;  %v943_v15 = vmul.f32 %v922_v62, %v1761_v17 }
 0xee4   :  { %v1248_v2 = vadd.f32 -1.0, %v939_v0  ;;  %v927_v3 = vmul.f32 %v1349_v58, %v926_v63 }
 0xee6   :  { %947 = vrot.lane.b32.xlu0 %v1248_v2, %s1526_s16  ;;  %v928_v5 = vadd.f32 %v1349_v58, %v927_v3 }
 0xee8   :  { %v932_v7 = vsel %vm931_vm10, %v1349_v58, %v928_v5 }
 0xee9   :  { %v937_v8 = vsel %vm934_vm11, %v936_v6, %v932_v7 }
 0xeea   :  { %v940_v9 = vmul.f32 2.0, %v937_v8  ;;  %v944_v21 = vmul.f32 %v937_v8, %v1765_v22 }
 0xeec   :  { %v1249_v10 = vadd.f32 -1.0, %v940_v9 }
 0xeee   :  { %949 = vrot.lane.b32.xlu1 %v1249_v10, %s1526_s16 }
 0xf58   :  { %v948_v11 = vpop.permute.xlu0 %947 }
 0xf59   :  { %v953_v12 = vmul.f32 %v948_v11, %v922_v62 }
 0xf5b   :  { %957 = vrot.lane.b32.xlu2 %v953_v12, %s1527_s17 }
 0xf60   :  { %v950_v13 = vpop.permute.xlu1 %949 }
 0xf61   :  { %v954_v14 = vmul.f32 %v950_v13, %v937_v8  ;;  %v215_v13 = vld [vmem:[%s1923_s1] sm:$0xff] }
 0xf63   :  { %959 = vrot.lane.b32.xlu0 %v954_v14, %s1527_s17  ;;  %v343_v14 = vld [vmem:[%s1923_s1 + $0x18] sm:$0xff] }
 0xfb5   :  { %v958_v16 = vpop.permute.xlu2 %957 }
 0xfb6   :  { %v1791_v18 = vadd.f32 %v958_v16, %v943_v15  ;;  %v596_v15 = vld [vmem:[%s1923_s1 + $0x30] sm:$0xff]  ;;  %v724_v16 = vld [vmem:[%s1923_s1 + $0x48] sm:$0xff] }
 0xfb8   :  { %1350 = vtanh.f32 %v1791_v18 }
 0xfbe   :  { %v1351_v20 = vpop.eup %1350 }
 0xfbf   :  { %969 = vrot.lane.b32.xlu1 %v1351_v20, %s1526_s16  ;;  %v977_v20 = vld [vmem:[%s1923_s1 + $0x60] sm:$0xff] }
 0xfd5   :  { %v960_v25 = vpop.permute.xlu0 %959 }
 0xfd6   :  { %v1796_v26 = vadd.f32 %v960_v25, %v944_v21 }
 0xfd8   :  { %1352 = vtanh.f32 %v1796_v26 }
 0xfde   :  { %v1353_v28 = vpop.eup %1352 }
 0xfdf   :  { %971 = vrot.lane.b32.xlu2 %v1353_v28, %s1526_s16  ;;  %v216_v28 = vld [vmem:[%s1923_s1 + $0x8] sm:$0xff] }
0x1031   :  { %v970_v24 = vpop.permute.xlu1 %969 }
0x1032   :  { %v1800_v17 = vmul.f32 %v970_v24, %v922_v62  ;;  %v469_v24 = vld [vmem:[%s1923_s1 + $0x20] sm:$0xff] }
0x1034   :  { %995 = vrot.lane.b32.xlu0 %v1800_v17, %s1527_s17 }
0x1039   :  { %v972_v31 = vpop.permute.xlu2 %971 }
0x103a   :  { %v1804_v33 = vmul.f32 %v972_v31, %v937_v8  ;;  %v597_v31 = vld [vmem:[%s1923_s1 + $0x38] sm:$0xff] }
0x103c   :  { %997 = vrot.lane.b32.xlu1 %v1804_v33, %s1527_s17 }
0x10a6   :  { %v996_v22 = vpop.permute.xlu0 %995 }
0x10a7   :  { %1250 = vmatmul.msk.f32.vlgmr.msrb.gmra.mxu3 %vm110_vm8, %v996_v22 }
0x10ae   :  { %v998_v34 = vpop.permute.xlu1 %997 }
0x10af   :  { %1251 = vmatmul.msk.f32.gmra.mxu3 %vm110_vm8, %v998_v34  ;;  %v850_v34 = vld [vmem:[%s1923_s1 + $0x50] sm:$0xff] }
0x112a   :  { %v1020_v37 = vpop.f32.mrf.mxu3 }
0x112b   :  { %v1026_v39 = vadd.f32 %v1020_v37, %v991_v35  ;;  %v978_v37 = vld [vmem:[%s1923_s1 + $0x68] sm:$0xff] }
0x112d   :  { %v1252_v40 = vmul.f32 -1.442695, %v1026_v39  ;;  %v342_v39 = vld [vmem:[%s1923_s1 + $0x10] sm:$0xff] }
0x112f   :  { %1354 = vpow2.f32 %v1252_v40  ;;  %v470_v40 = vld [vmem:[%s1923_s1 + $0x28] sm:$0xff] }
0x1132   :  { %v1023_v42 = vpop.f32.mrf.mxu3 }
0x1133   :  { %v1027_v43 = vadd.f32 %v1023_v42, %v992_v41  ;;  %v1104_v41 = vld [vmem:[%s1923_s1 + $0x70] sm:$0xff]  ;;  %v723_v42 = vld [vmem:[%s1923_s1 + $0x40] sm:$0xff] }
0x1135   :  { %v1355_v45 = vpop.eup %1354  ;;  %v1253_v47 = vmul.f32 -1.442695, %v1027_v43  ;;  %v851_v43 = vld [vmem:[%s1923_s1 + $0x58] sm:$0xff] }
0x1136   :  { %v1034_v48 = vadd.f32 1.0, %v1355_v45  ;;  %v1119_v45 = vld [vmem:[#allocation2 + $0x8] sm:$0xff] }
0x1137   :  { %1356 = vpow2.f32 %v1253_v47 }
0x1138   :  { %1358 = vrcp.f32 %v1034_v48  ;;  %v1047_v55 = vand.u32 2147483648, %v1034_v48  ;;  %v1045_v58 = vand.u32 2147483647, %v1034_v48  ;;  %vm1041_vm13 = vweird.f32 %v1034_v48 }
0x113a   :  { %v1048_v61 = vor.u32 1.1754944e-38, %v1047_v55  ;;  %vm1046_vm15 = vcmp.eq.f32.partialorder %v1045_v58, 8.507059e+37  ;;  %v1105_v55 = vld [vmem:[%s1923_s1 + $0x78] sm:$0xff]  ;;  %s1529_s1 = smov [#allocation11]  }
0x113d   :  { %v1357_v49 = vpop.eup %1356 }
0x113e   :  { %v1359_v50 = vpop.eup %1358  ;;  %v1035_v51 = vadd.f32 1.0, %v1357_v49 }
0x113f   :  { %v1037_v52 = vmul.f32 %v1359_v50, %v1034_v48  ;;  %vm1042_vm12 = vweird.f32 %v1359_v50 }
0x1140   :  { %1360 = vrcp.f32 %v1035_v51  ;;  %vm1043_vm14 = vmor %vm1041_vm13, %vm1042_vm12  ;;  %v1062_v3 = vand.u32 2147483648, %v1035_v51  ;;  %v1060_v6 = vand.u32 2147483647, %v1035_v51  ;;  %vm1056_vm1 = vweird.f32 %v1035_v51 }
0x1141   :  { %v1038_v53 = vsub.f32 1.0, %v1037_v52 }
0x1142   :  { %v1063_v8 = vor.u32 1.1754944e-38, %v1062_v3  ;;  %vm1061_vm3 = vcmp.eq.f32.partialorder %v1060_v6, 8.507059e+37 }
0x1143   :  { %v1039_v57 = vmul.f32 %v1359_v50, %v1038_v53 }
0x1145   :  { %v1040_v59 = vadd.f32 %v1359_v50, %v1039_v57 }
0x1146   :  { %v1361_v60 = vpop.eup %1360 }
0x1147   :  { %v1052_v62 = vmul.f32 %v1361_v60, %v1035_v51  ;;  %v1044_v63 = vsel %vm1043_vm14, %v1359_v50, %v1040_v59  ;;  %vm1057_vm0 = vweird.f32 %v1361_v60 }
0x1148   :  { %v1816_v0 = vsel %vm1046_vm15, %v1048_v61, %v1044_v63  ;;  %vm1058_vm2 = vmor %vm1056_vm1, %vm1057_vm0 }
0x1149   :  { %v1053_v1 = vsub.f32 1.0, %v1052_v62  ;;  %v1066_v2 = vmul.f32 2.0, %v1816_v0  ;;  %v1070_v47 = vmul.f32 %v1816_v0, %v1791_v18  ;;  %v1118_v18 = vld [vmem:[#allocation2] sm:$0xff] }
0x114b   :  { %v1254_v4 = vadd.f32 -1.0, %v1066_v2  ;;  %v1054_v5 = vmul.f32 %v1361_v60, %v1053_v1 }
0x114d   :  { %1074 = vrot.lane.b32.xlu2 %v1254_v4, %s1526_s16  ;;  %v1055_v7 = vadd.f32 %v1361_v60, %v1054_v5  ;;  %v1134_v4 = vld [vmem:[#allocation5 + $0x18] sm:$0xff]  ;;  %v1133_v5 = vld [vmem:[#allocation5 + $0x10] sm:$0xff] }
0x114e   :  { %1153 = vmatpush.msra.mxu0 %v1134_v4 }
0x114f   :  { %v1059_v9 = vsel %vm1058_vm2, %v1361_v60, %v1055_v7 }
0x1150   :  { %v1820_v10 = vsel %vm1061_vm3, %v1063_v8, %v1059_v9  ;;  %v1132_v9 = vld [vmem:[#allocation5 + $0x8] sm:$0xff]  ;;  %1154 = vmatpush.msra.mxu0 %v1133_v5 }
0x1151   :  { %v1067_v11 = vmul.f32 2.0, %v1820_v10  ;;  %v1071_v50 = vmul.f32 %v1820_v10, %v1796_v26 }
0x1152   :  { %1155 = vmatpush.msra.mxu0 %v1132_v9 }
0x1153   :  { %v1255_v12 = vadd.f32 -1.0, %v1067_v11 }
0x1155   :  { %1076 = vrot.lane.b32.xlu0 %v1255_v12, %s1526_s16 }
0x115d   :  { %219 = vrot.lane.b32.xlu0 %v215_v13, %s1528_s20 }
0x1165   :  { %348 = vrot.lane.b32.xlu0 %v343_v14, %s1528_s20 }
0x116d   :  { %600 = vrot.lane.b32.xlu0 %v596_v15, %s1528_s20  ;;  %v1131_v15 = vld [vmem:[#allocation5] sm:$0xff] }
0x116e   :  { %1156 = vmatpush.msra.mxu0 %v1131_v15 }
0x1175   :  { %729 = vrot.lane.b32.xlu0 %v724_v16, %s1528_s20 }
0x117d   :  { %981 = vrot.lane.b32.xlu0 %v977_v20, %s1528_s20 }
0x11a7   :  { %v1075_v21 = vpop.permute.xlu2 %1074 }
0x11a8   :  { %v1080_v25 = vmul.f32 %v1075_v21, %v1816_v0 }
0x11aa   :  { %1084 = vrot.lane.b32.xlu1 %v1080_v25, %s1527_s17 }
0x11b2   :  { %221 = vrot.lane.b32.xlu1 %v216_v28, %s1528_s20 }
0x11ba   :  { %473 = vrot.lane.b32.xlu1 %v469_v24, %s1528_s20 }
0x11c2   :  { %602 = vrot.lane.b32.xlu1 %v597_v31, %s1528_s20 }
0x11c7   :  { %v1077_v22 = vpop.permute.xlu0 %1076 }
0x11c8   :  { %v1081_v35 = vmul.f32 %v1077_v22, %v1820_v10 }
0x11ca   :  { %854 = vrot.lane.b32.xlu1 %v850_v34, %s1528_s20  ;;  %1086 = vrot.lane.b32.xlu2 %v1081_v35, %s1527_s17 }
0x11cf   :  { %v220_v26 = vpop.permute.xlu0 %219 }
0x11d0   :  { %v225_v12 = vmul.f32 %v220_v26, %v1620_v54 }
0x11d2   :  { %983 = vrot.lane.b32.xlu1 %v978_v37, %s1528_s20  ;;  %346 = vrot.lane.b32.xlu2 %v342_v39, %s1528_s20 }
0x11d7   :  { %v349_v61 = vpop.permute.xlu0 %348 }
0x11d8   :  { %v353_v13 = vmul.f32 %v349_v61, %v1654_v46  ;;  %v1166_v61 = vld [vmem:[#allocation10] sm:$0xff] }
0x11da   :  { %475 = vrot.lane.b32.xlu2 %v470_v40, %s1528_s20  ;;  %1108 = vrot.lane.b32.xlu1 %v1104_v41, %s1528_s20 }
0x11df   :  { %v601_v1 = vpop.permute.xlu0 %600 }
0x11e0   :  { %v606_v54 = vmul.f32 %v601_v1, %v1710_v29 }
0x11e2   :  { %727 = vrot.lane.b32.xlu2 %v723_v42, %s1528_s20  ;;  %1124 = vrot.lane.b32.xlu1 %v1119_v45, %s1528_s20 }
0x11e7   :  { %v730_v6 = vpop.permute.xlu0 %729 }
0x11ea   :  { %856 = vrot.lane.b32.xlu2 %v851_v43, %s1528_s20 }
0x11ef   :  { %v982_v24 = vpop.permute.xlu0 %981 }
0x121c   :  { %v1085_v48 = vpop.permute.xlu1 %1084 }
0x121d   :  { %v1090_v49 = vadd.f32 %v1085_v48, %v1070_v47 }
0x121f   :  { %1362 = vtanh.f32 %v1090_v49 }
0x1224   :  { %v1087_v51 = vpop.permute.xlu2 %1086  ;;  %v222_v58 = vpop.permute.xlu1 %221 }
0x1225   :  { %v1363_v52 = vpop.eup %1362  ;;  %v1091_v53 = vadd.f32 %v1087_v51, %v1071_v50  ;;  %v226_v7 = vmul.f32 %v222_v58, %v1624_v56  ;;  %v1135_v58 = vld [vmem:[#allocation7] sm:$0xff] }
0x1226   :  { %1096 = vrot.lane.b32.xlu2 %v1363_v52, %s1526_s16 }
0x1227   :  { %1364 = vtanh.f32 %v1091_v53  ;;  %v355_v16 = vadd.f32 %v353_v13, %v226_v7 }
0x122c   :  { %v347_v59 = vpop.permute.xlu2 %346  ;;  %v474_v60 = vpop.permute.xlu1 %473 }
0x122d   :  { %v1365_v57 = vpop.eup %1364  ;;  %v352_v8 = vmul.f32 %v347_v59, %v1650_v44  ;;  %v479_v21 = vmul.f32 %v474_v60, %v1680_v36 }
0x122e   :  { %1098 = vrot.lane.b32.xlu0 %v1365_v57, %s1526_s16  ;;  %1110 = vrot.lane.b32.xlu2 %v1105_v55, %s1528_s20  ;;  %v1165_v57 = vld [vmem:[#allocation8 + $0x18] sm:$0xff]  ;;  %s1196_s16 = sshll.u32 %s1529_s1, 4  ;;  %s1197_s16 = int_to_ptr.vmem [resolvable:$true] %s1196_s16 }
0x122f   :  { %v354_v20 = vadd.f32 %v352_v8, %v225_v12  ;;  %1182 = vmatpush.msra.mxu1 %v1165_v57 }
0x1231   :  { %v481_v28 = vadd.f32 %v479_v21, %v354_v20 }
0x1233   :  { %v608_v34 = vadd.f32 %v606_v54, %v481_v28 }
0x1234   :  { %v476_v62 = vpop.permute.xlu2 %475  ;;  %v603_v63 = vpop.permute.xlu1 %602 }
0x1235   :  { %v480_v14 = vmul.f32 %v476_v62, %v1684_v38  ;;  %v607_v44 = vmul.f32 %v603_v63, %v1714_v32  ;;  %v734_v38 = vmul.f32 %v730_v6, %v1744_v30  ;;  %v987_v30 = vmul.f32 %v982_v24, %v1800_v17 }
0x1236   :  { %1122 = vrot.lane.b32.xlu0 %v1118_v18, %s1528_s20  ;;  %v1164_v18 = vld [vmem:[#allocation8 + $0x10] sm:$0xff] }
0x1237   :  { %v482_v25 = vadd.f32 %v480_v14, %v355_v16  ;;  %1183 = vmatpush.msra.mxu1 %v1164_v18 }
0x1239   :  { %v609_v22 = vadd.f32 %v607_v44, %v482_v25 }
0x123b   :  { %v736_v39 = vadd.f32 %v734_v38, %v609_v22 }
0x123c   :  { %v728_v2 = vpop.permute.xlu2 %727  ;;  %v855_v3 = vpop.permute.xlu1 %854 }
0x123d   :  { %v733_v46 = vmul.f32 %v728_v2, %v1740_v23  ;;  %v860_v40 = vmul.f32 %v855_v3, %v1770_v19 }
0x123f   :  { %v735_v37 = vadd.f32 %v733_v46, %v608_v34 }
0x1241   :  { %v862_v45 = vadd.f32 %v860_v40, %v735_v37 }
0x1243   :  { %v989_v50 = vadd.f32 %v987_v30, %v862_v45 }
0x1244   :  { %v857_v11 = vpop.permute.xlu2 %856  ;;  %v984_v56 = vpop.permute.xlu1 %983 }
0x1245   :  { %v861_v35 = vmul.f32 %v857_v11, %v1774_v27  ;;  %v988_v29 = vmul.f32 %v984_v56, %v1804_v33  ;;  %v1163_v33 = vld [vmem:[#allocation8 + $0x8] sm:$0xff] }
0x1246   :  { %1184 = vmatpush.msra.mxu1 %v1163_v33 }
0x1247   :  { %v863_v41 = vadd.f32 %v861_v35, %v736_v39 }
0x1249   :  { %v990_v27 = vadd.f32 %v988_v29, %v863_v41 }
0x124c   :  { %v1109_v36 = vpop.permute.xlu1 %1108 }
0x1254   :  { %v1125_v51 = vpop.permute.xlu1 %1124 }
0x1280   :  { %v1097_v31 = vpop.permute.xlu2 %1096 }
0x1281   :  { %v1102_v32 = vmul.f32 %v1097_v31, %v1816_v0 }
0x1283   :  { %v1114_v47 = vmul.f32 %v1109_v36, %v1102_v32 }
0x1285   :  { %v1116_v52 = vadd.f32 %v1114_v47, %v989_v50 }
0x1288   :  { %v1111_v43 = vpop.permute.xlu2 %1110 }
0x12a0   :  { %v1099_v42 = vpop.permute.xlu0 %1098 }
0x12a1   :  { %v1103_v23 = vmul.f32 %v1099_v42, %v1820_v10  ;;  %v1162_v10 = vld [vmem:[#allocation8] sm:$0xff] }
0x12a2   :  { %1185 = vmatpush.msra.mxu1 %v1162_v10 }
0x12a3   :  { %v1115_v48 = vmul.f32 %v1111_v43, %v1103_v23 }
0x12a5   :  { %v1117_v49 = vadd.f32 %v1115_v48, %v990_v27 }
0x12a7   :  { %v1129_v53 = vmul.f32 %v1125_v51, %v1117_v49 }
0x12a8   :  { %v1123_v19 = vpop.permute.xlu0 %1122 }
0x12a9   :  { %v1128_v55 = vmul.f32 %v1123_v19, %v1116_v52 }
0x12ab   :  { %v1130_v0 = vmax.f32 %v1128_v55, %v1129_v53 }
0x12ad   :  { %1137 = vrot.lane.b32.xlu2 %v1130_v0, %s1527_s17 }
0x1307   :  { %v1138_v17 = vpop.permute.xlu2 %1137 }
0x1308   :  { %1256 = vmatmul.msk.f32.vlgmr.msra.gmra.mxu0 %vm110_vm8, %v1138_v17 }
0x1385   :  { %v1158_v26 = vpop.f32.mrf.mxu0 }
0x1386   :  { %v1159_v59 = vadd.f32 %v1158_v26, %v1135_v58 }
0x1388   :  { %v1161_v60 = vmax.f32 %v1159_v59, 0.0 }
0x138a   :  { %1257 = vmatmul.msk.f32.vlgmr.msra.gmra.mxu1 %vm110_vm8, %v1161_v60 }
0x1407   :  { %v1187_v62 = vpop.f32.mrf.mxu1 }
0x1408   :  { %v1188_v63 = vadd.f32 %v1187_v62, %v1166_v61 }
0x140a   :  { %1190 = vst [vmem:[#allocation11] sm:$0xff] %v1188_v63 }
0x140b   :  { %1201 = dma.vmem_to_hbm [thread:$0]  %s1197_s16, 128, %s1199_s24, [#allocation4]  }
0x140c   :  { %1516 = dma.done.wait [#allocation4], 128  }
0x140d   :  { %1517 = vsyncadd [#allocation4], 4294967168 }
0x140e   :  { %1206 = vsyncpa [#allocation3], 1 }
0x140f   :  { %1207 = vsyncpa [#allocation6], 1 }
0x1410   :  { %1208 = vsyncpa [#allocation9], 1 }
0x1411   :  { %1209 = vsyncpa [#allocation4], 1 }

</bundles_post_ra>
